<compile_context>
chip_gen: v6e
topology: v6e:2x2x1
jax: 0.10.0
libtpu: 0.0.40
codegen_flags: <defaults>
</compile_context>

<pallas_src>
import math
import functools

import jax
import jax.numpy as jnp
from jax.experimental import pallas as pl
from jax.experimental.pallas import tpu as pltpu

NUM_HEADS = 8
EMBED_DIM = 256   # vggish=True => speech_embed_dim = 256; skeleton_embed_dim = 256
MLP_HIDDEN = 64
NUM_CLASSES = 2
PAD_CLASSES = 128  # lane-dense output width; wrapper slices back to NUM_CLASSES


# ----------------------------------------------------------------------------- fused kernel

def fused_cross_attn_kernel(skel_ref, audio_ref, pe_s_ref, pe_a_ref, mask_ref,
                            wqkv_ref, bqkv_ref, wo_ref, bo_ref,
                            w1_ref, b1_ref, w2_ref, b2_ref,
                            o_ref, *, num_heads, scale):
    # skel_ref / audio_ref: (NB, S, D) f32 blocks covering NB batch elements.
    nb, S, D = skel_ref.shape
    dh = D // num_heads
    M = nb * S          # rows per modality in this block
    rows = 2 * M        # skeleton rows then audio rows

    # --- PositionalEncoding add (dropout = identity in eval) -------------------
    skel = (skel_ref[...] + pe_s_ref[...]).reshape(M, D)     # (M, D) f32
    audio = (audio_ref[...] + pe_a_ref[...]).reshape(M, D)   # (M, D) f32

    # rows [0:M] = skeleton (batch-major), [M:2M] = audio (batch-major)
    x = jnp.concatenate([skel, audio], axis=0)               # (rows, D) f32

    # --- fused QKV projection (shared weights, both directions, one matmul) ----
    qkv = jnp.dot(x.astype(jnp.bfloat16), wqkv_ref[...],
                  preferred_element_type=jnp.float32) + bqkv_ref[...]   # (rows, 3D) f32
    # Pre-scale Q once instead of scaling every per-head score matrix.
    q = (qkv[:, :D] * scale).astype(jnp.bfloat16)
    k = qkv[:, D:2 * D].astype(jnp.bfloat16)
    v = qkv[:, 2 * D:].astype(jnp.bfloat16)

    # Precomputed additive mask: 0 where (same batch AND other modality), -1e30 elsewhere.
    mask_bias = mask_ref[...]                                 # (rows, rows) f32

    # --- per-head attention; heads are static 32-lane slices (no transposes) ---
    ctx_parts = []
    for h in range(num_heads):
        sl = slice(h * dh, (h + 1) * dh)
        qh = q[:, sl]   # (rows, dh) bf16
        kh = k[:, sl]
        vh = v[:, sl]

        # scores for both directions of all NB batch elements at once: (rows, rows)
        s = jax.lax.dot_general(qh, kh, (((1,), (1,)), ((), ())),
                                preferred_element_type=jnp.float32)
        s = s + mask_bias

        m = jnp.max(s, axis=-1, keepdims=True)
        p = jnp.exp(s - m)
        l = jnp.sum(p, axis=-1, keepdims=True)
        p = p * pl.reciprocal(l, approx=True)                 # EUP reciprocal

        ctx_parts.append(jnp.dot(p.astype(jnp.bfloat16), vh,
                                 preferred_element_type=jnp.float32))   # (rows, dh)

    ctx = jnp.concatenate(ctx_parts, axis=-1)                 # (rows, D) lane-dense

    # --- output projection ------------------------------------------------------
    out = jnp.dot(ctx.astype(jnp.bfloat16), wo_ref[...],
                  preferred_element_type=jnp.float32) + bo_ref[...]     # (rows, D)
    skel_out = out[:M]      # cross-attended skeleton features (queries=skel)
    audio_out = out[M:]     # cross-attended audio features    (queries=audio)

    # --- mm_classifier fused; never materialize the (M, 512) concat --------------
    h1 = (jnp.dot(skel_out.astype(jnp.bfloat16), w1_ref[:D],
                  preferred_element_type=jnp.float32)
          + jnp.dot(audio_out.astype(jnp.bfloat16), w1_ref[D:],
                    preferred_element_type=jnp.float32)
          + b1_ref[...])                                                # (M, 64)
    h1 = jnp.maximum(h1, 0.0)
    # w2/b2 are zero-padded to PAD_CLASSES lanes -> lane-dense output block/store.
    logits = jnp.dot(h1.astype(jnp.bfloat16), w2_ref[...],
                     preferred_element_type=jnp.float32) + b2_ref[...]  # (M, PAD_CLASSES)

    o_ref[...] = logits.reshape(nb, S, -1).astype(o_ref.dtype)


# ----------------------------------------------------------------------------- wrapper

def _pick_batch_tile(n, s, max_rows=128):
    """Largest divisor of n such that 2*nb*s rows fit a nice MXU-sized block."""
    best = 1
    for nb in range(1, n + 1):
        if n % nb == 0 and 2 * nb * s <= max_rows:
            best = nb
    return best


def _build_mask_bias(nb, s):
    """Additive bias (2*nb*s, 2*nb*s): 0 iff same batch AND other modality, else -1e30.

    Row layout: rows [0 : nb*s) skeleton (batch-major), rows [nb*s : 2*nb*s) audio."""
    rows = 2 * nb * s
    r = jnp.arange(rows, dtype=jnp.int32)
    batch_id = (r // s) % nb
    mod_id = r // (nb * s)
    allowed = (batch_id[:, None] == batch_id[None, :]) & (mod_id[:, None] != mod_id[None, :])
    return jnp.where(allowed, 0.0, -1e30).astype(jnp.float32)


def cross_attn_forward(audio_emb, skeleton_emb, params):
    """CrossAttn.forward with default flags (vggish=True, no audio/skeleton encoders,
    sanity_check=False).  Inputs are the external-model embeddings."""
    N, S, D = skeleton_emb.shape
    assert audio_emb.shape == (N, S, D)
    H = NUM_HEADS
    scale = 1.0 / math.sqrt(D // H)

    NB = _pick_batch_tile(N, S)
    rows = 2 * NB * S
    mask_bias = _build_mask_bias(NB, S)

    # zero-pad classifier head to a lane-dense 128-wide output (values identical in [:, :2])
    w2p = jnp.zeros((MLP_HIDDEN, PAD_CLASSES), jnp.bfloat16).at[:, :NUM_CLASSES].set(params["w2"])
    b2p = jnp.zeros((1, PAD_CLASSES), jnp.float32).at[:, :NUM_CLASSES].set(params["b2"])

    kernel = functools.partial(fused_cross_attn_kernel, num_heads=H, scale=scale)

    padded = pl.pallas_call(
        kernel,
        out_shape=jax.ShapeDtypeStruct((N, S, PAD_CLASSES), jnp.float32),
        grid=(N // NB,),
        in_specs=[
            pl.BlockSpec((NB, S, D), lambda n: (n, 0, 0)),       # skeleton emb
            pl.BlockSpec((NB, S, D), lambda n: (n, 0, 0)),       # audio emb
            pl.BlockSpec((S, D), lambda n: (0, 0)),              # pe_skel[:S]
            pl.BlockSpec((S, D), lambda n: (0, 0)),              # pe_speech[:S]
            pl.BlockSpec((rows, rows), lambda n: (0, 0)),        # modality/batch mask bias
            pl.BlockSpec((D, 3 * D), lambda n: (0, 0)),          # wqkv (bf16)
            pl.BlockSpec((1, 3 * D), lambda n: (0, 0)),          # bqkv (f32)
            pl.BlockSpec((D, D), lambda n: (0, 0)),              # wo   (bf16)
            pl.BlockSpec((1, D), lambda n: (0, 0)),              # bo   (f32)
            pl.BlockSpec((2 * D, MLP_HIDDEN), lambda n: (0, 0)),     # w1 (bf16)
            pl.BlockSpec((1, MLP_HIDDEN), lambda n: (0, 0)),         # b1 (f32)
            pl.BlockSpec((MLP_HIDDEN, PAD_CLASSES), lambda n: (0, 0)),  # w2 padded (bf16)
            pl.BlockSpec((1, PAD_CLASSES), lambda n: (0, 0)),           # b2 padded (f32)
        ],
        out_specs=pl.BlockSpec((NB, S, PAD_CLASSES), lambda n: (n, 0, 0)),
        compiler_params=pltpu.CompilerParams(
            dimension_semantics=("parallel",)),   # batch tiles split across TCs
    )(
        skeleton_emb, audio_emb,
        params["pe_skel"][:S], params["pe_speech"][:S],
        mask_bias,
        params["wqkv"], params["bqkv"],
        params["wo"], params["bo"],
        params["w1"], params["b1"],
        w2p, b2p,
    )
    preds = padded[:, :, :NUM_CLASSES]
    return preds, preds, preds


# ----------------------------------------------------------------------------- parameter init

def make_positional_encoding(max_len, d_model):
    position = jnp.arange(max_len, dtype=jnp.float32)[:, None]
    div_term = jnp.exp(
        jnp.arange(0, d_model, 2, dtype=jnp.float32) * (-math.log(10000.0) / d_model)
    )
    pe = jnp.zeros((max_len, d_model), jnp.float32)
    pe = pe.at[:, 0::2].set(jnp.sin(position * div_term))
    pe = pe.at[:, 1::2].set(jnp.cos(position * div_term))
    return pe


def xavier_uniform(key, fan_in, fan_out):
    limit = math.sqrt(6.0 / (fan_in + fan_out))
    return jax.random.uniform(key, (fan_in, fan_out), jnp.float32, -limit, limit)


def init_params(key):
    D = EMBED_DIM
    keys = jax.random.split(key, 8)
    wq = xavier_uniform(keys[0], D, D)
    wk = xavier_uniform(keys[1], D, D)
    wv = xavier_uniform(keys[2], D, D)
    wo = xavier_uniform(keys[3], D, D)
    w1 = xavier_uniform(keys[4], 2 * D, MLP_HIDDEN)
    w2 = xavier_uniform(keys[5], MLP_HIDDEN, NUM_CLASSES)
    return {
        # fused QKV projection: shared-weight cross_att, both directions
        "wqkv": jnp.concatenate([wq, wk, wv], axis=1).astype(jnp.bfloat16),
        "bqkv": jnp.zeros((1, 3 * D), jnp.float32),
        "wo": wo.astype(jnp.bfloat16),
        "bo": jnp.zeros((1, D), jnp.float32),
        # mm_classifier
        "w1": w1.astype(jnp.bfloat16),
        "b1": jnp.zeros((1, MLP_HIDDEN), jnp.float32),
        "w2": w2.astype(jnp.bfloat16),
        "b2": jnp.zeros((1, NUM_CLASSES), jnp.float32),
        # positional encodings
        "pe_skel": make_positional_encoding(100, D),    # skeleton_positional_encoding
        "pe_speech": make_positional_encoding(500, D),  # speech_positional_encoding
    }


# ----------------------------------------------------------------------------- main

if __name__ == "__main__":
    key = jax.random.PRNGKey(0)
    k_audio, k_skel, k_params = jax.random.split(key, 3)

    N, S, D = 2, 8, EMBED_DIM
    # Embeddings as produced by the external Vggish audio model and STGCN joints_embed
    # (both map each of the S windows to a 256-d vector).
    audio_emb = jax.random.normal(k_audio, (N, S, D), jnp.float32)
    skeleton_emb = jax.random.normal(k_skel, (N, S, D), jnp.float32)

    params = init_params(k_params)

    preds, _, _ = cross_attn_forward(audio_emb, skeleton_emb, params)
    jax.block_until_ready(preds)
    assert preds.shape == (N, S, NUM_CLASSES)
    assert bool(jnp.all(jnp.isfinite(preds)))
    print("KERNEL_OK")
</pallas_src>

<mosaic_0001>
module attributes {stable_mosaic.version = 11 : i64} {
  func.func @fused_cross_attn_kernel(%arg0: i32, %arg1: memref<2x8x256xf32, #tpu.memory_space<vmem>>, %arg2: memref<2x8x256xf32, #tpu.memory_space<vmem>>, %arg3: memref<8x256xf32, #tpu.memory_space<vmem>>, %arg4: memref<8x256xf32, #tpu.memory_space<vmem>>, %arg5: memref<32x32xf32, #tpu.memory_space<vmem>>, %arg6: memref<256x768xbf16, #tpu.memory_space<vmem>>, %arg7: memref<1x768xf32, #tpu.memory_space<vmem>>, %arg8: memref<256x256xbf16, #tpu.memory_space<vmem>>, %arg9: memref<1x256xf32, #tpu.memory_space<vmem>>, %arg10: memref<512x64xbf16, #tpu.memory_space<vmem>>, %arg11: memref<1x64xf32, #tpu.memory_space<vmem>>, %arg12: memref<64x128xbf16, #tpu.memory_space<vmem>>, %arg13: memref<1x128xf32, #tpu.memory_space<vmem>>, %arg14: memref<2x8x128xf32, #tpu.memory_space<vmem>>) attributes {dimension_semantics = [#tpu.dimension_semantics<parallel>], iteration_bounds = array<i64: 1>, scalar_prefetch = 0 : i64, scratch_operands = 0 : i64, tpu.core_type = #tpu.core_type<tc>, window_params = [{transform_indices = @transform_0, window_bounds = array<i64: 2, 8, 256>}, {transform_indices = @transform_1, window_bounds = array<i64: 2, 8, 256>}, {pipeline_mode = #tpu.pipeline_mode<synchronous>, transform_indices = @transform_2, window_bounds = array<i64: 8, 256>}, {pipeline_mode = #tpu.pipeline_mode<synchronous>, transform_indices = @transform_3, window_bounds = array<i64: 8, 256>}, {pipeline_mode = #tpu.pipeline_mode<synchronous>, transform_indices = @transform_4, window_bounds = array<i64: 32, 32>}, {pipeline_mode = #tpu.pipeline_mode<synchronous>, transform_indices = @transform_5, window_bounds = array<i64: 256, 768>}, {pipeline_mode = #tpu.pipeline_mode<synchronous>, transform_indices = @transform_6, window_bounds = array<i64: 1, 768>}, {pipeline_mode = #tpu.pipeline_mode<synchronous>, transform_indices = @transform_7, window_bounds = array<i64: 256, 256>}, {pipeline_mode = #tpu.pipeline_mode<synchronous>, transform_indices = @transform_8, window_bounds = array<i64: 1, 256>}, {pipeline_mode = #tpu.pipeline_mode<synchronous>, transform_indices = @transform_9, window_bounds = array<i64: 512, 64>}, {pipeline_mode = #tpu.pipeline_mode<synchronous>, transform_indices = @transform_10, window_bounds = array<i64: 1, 64>}, {pipeline_mode = #tpu.pipeline_mode<synchronous>, transform_indices = @transform_11, window_bounds = array<i64: 64, 128>}, {pipeline_mode = #tpu.pipeline_mode<synchronous>, transform_indices = @transform_12, window_bounds = array<i64: 1, 128>}, {transform_indices = @transform_13, window_bounds = array<i64: 2, 8, 128>}]} {
    %c0 = arith.constant 0 : index
    %c0_0 = arith.constant 0 : index
    %c0_1 = arith.constant 0 : index
    %0 = vector.load %arg1[%c0, %c0_0, %c0_1] : memref<2x8x256xf32, #tpu.memory_space<vmem>>, vector<2x8x256xf32>
    %c0_2 = arith.constant 0 : index
    %c0_3 = arith.constant 0 : index
    %1 = vector.load %arg3[%c0_2, %c0_3] : memref<8x256xf32, #tpu.memory_space<vmem>>, vector<8x256xf32>
    %2 = vector.shape_cast %1 : vector<8x256xf32> to vector<1x8x256xf32>
    %3 = vector.broadcast %2 : vector<1x8x256xf32> to vector<2x8x256xf32>
    %4 = arith.addf %0, %3 : vector<2x8x256xf32>
    %5 = vector.shape_cast %4 : vector<2x8x256xf32> to vector<16x256xf32>
    %c0_4 = arith.constant 0 : index
    %c0_5 = arith.constant 0 : index
    %c0_6 = arith.constant 0 : index
    %6 = vector.load %arg2[%c0_4, %c0_5, %c0_6] : memref<2x8x256xf32, #tpu.memory_space<vmem>>, vector<2x8x256xf32>
    %c0_7 = arith.constant 0 : index
    %c0_8 = arith.constant 0 : index
    %7 = vector.load %arg4[%c0_7, %c0_8] : memref<8x256xf32, #tpu.memory_space<vmem>>, vector<8x256xf32>
    %8 = vector.shape_cast %7 : vector<8x256xf32> to vector<1x8x256xf32>
    %9 = vector.broadcast %8 : vector<1x8x256xf32> to vector<2x8x256xf32>
    %10 = arith.addf %6, %9 : vector<2x8x256xf32>
    %11 = vector.shape_cast %10 : vector<2x8x256xf32> to vector<16x256xf32>
    %12 = tpu.concatenate %5, %11 in 0 : vector<16x256xf32>, vector<16x256xf32> -> vector<32x256xf32>
    %13 = arith.truncf %12 : vector<32x256xf32> to vector<32x256xbf16>
    %c0_9 = arith.constant 0 : index
    %c0_10 = arith.constant 0 : index
    %14 = vector.load %arg6[%c0_9, %c0_10] : memref<256x768xbf16, #tpu.memory_space<vmem>>, vector<256x768xbf16>
    %cst = arith.constant dense<0.000000e+00> : vector<32x768xf32>
    %15 = tpu.matmul %13, %14, %cst {dimension_numbers = #tpu.dot_dimension_numbers<[1], [0], [0], [1], [0, 0, 1, 1], [], []>} : vector<32x256xbf16>, vector<256x768xbf16>, vector<32x768xf32> -> vector<32x768xf32>
    %c0_11 = arith.constant 0 : index
    %c0_12 = arith.constant 0 : index
    %16 = vector.load %arg7[%c0_11, %c0_12] : memref<1x768xf32, #tpu.memory_space<vmem>>, vector<1x768xf32>
    %17 = vector.broadcast %16 : vector<1x768xf32> to vector<32x768xf32>
    %18 = arith.addf %15, %17 : vector<32x768xf32>
    %19 = vector.extract_strided_slice %18 {offsets = [0, 0], sizes = [32, 256], strides = [1, 1]} : vector<32x768xf32> to vector<32x256xf32>
    %cst_13 = arith.constant 0.176776692 : f32
    %20 = vector.broadcast %cst_13 : f32 to vector<32x256xf32>
    %21 = arith.mulf %19, %20 : vector<32x256xf32>
    %22 = arith.truncf %21 : vector<32x256xf32> to vector<32x256xbf16>
    %23 = vector.extract_strided_slice %18 {offsets = [0, 256], sizes = [32, 256], strides = [1, 1]} : vector<32x768xf32> to vector<32x256xf32>
    %24 = arith.truncf %23 : vector<32x256xf32> to vector<32x256xbf16>
    %25 = vector.extract_strided_slice %18 {offsets = [0, 512], sizes = [32, 256], strides = [1, 1]} : vector<32x768xf32> to vector<32x256xf32>
    %26 = arith.truncf %25 : vector<32x256xf32> to vector<32x256xbf16>
    %c0_14 = arith.constant 0 : index
    %c0_15 = arith.constant 0 : index
    %27 = vector.load %arg5[%c0_14, %c0_15] : memref<32x32xf32, #tpu.memory_space<vmem>>, vector<32x32xf32>
    %28 = vector.extract_strided_slice %22 {offsets = [0, 0], sizes = [32, 32], strides = [1, 1]} : vector<32x256xbf16> to vector<32x32xbf16>
    %29 = vector.extract_strided_slice %24 {offsets = [0, 0], sizes = [32, 32], strides = [1, 1]} : vector<32x256xbf16> to vector<32x32xbf16>
    %30 = vector.extract_strided_slice %26 {offsets = [0, 0], sizes = [32, 32], strides = [1, 1]} : vector<32x256xbf16> to vector<32x32xbf16>
    %cst_16 = arith.constant dense<0.000000e+00> : vector<32x32xf32>
    %31 = tpu.matmul %28, %29, %cst_16 {dimension_numbers = #tpu.dot_dimension_numbers<[1], [1], [0], [0], [0, 0, 1, 0], [], []>} : vector<32x32xbf16>, vector<32x32xbf16>, vector<32x32xf32> -> vector<32x32xf32>
    %32 = arith.addf %31, %27 : vector<32x32xf32>
    %cst_17 = arith.constant dense<0xFF800000> : vector<32xf32>
    %33 = vector.multi_reduction <maximumf>, %32, %cst_17 [1] : vector<32x32xf32> to vector<32xf32>
    %34 = vector.shape_cast %33 : vector<32xf32> to vector<32x1xf32>
    %35 = vector.broadcast %34 : vector<32x1xf32> to vector<32x32xf32>
    %36 = arith.subf %32, %35 : vector<32x32xf32>
    %37 = math.exp %36 : vector<32x32xf32>
    %cst_18 = arith.constant dense<0.000000e+00> : vector<32xf32>
    %38 = vector.multi_reduction <add>, %37, %cst_18 [1] : vector<32x32xf32> to vector<32xf32>
    %39 = vector.shape_cast %38 : vector<32xf32> to vector<32x1xf32>
    %40 = tpu.reciprocal %39 {approx = true} : vector<32x1xf32> -> vector<32x1xf32>
    %41 = vector.broadcast %40 : vector<32x1xf32> to vector<32x32xf32>
    %42 = arith.mulf %37, %41 : vector<32x32xf32>
    %43 = arith.truncf %42 : vector<32x32xf32> to vector<32x32xbf16>
    %cst_19 = arith.constant dense<0.000000e+00> : vector<32x32xf32>
    %44 = tpu.matmul %43, %30, %cst_19 {dimension_numbers = #tpu.dot_dimension_numbers<[1], [0], [0], [1], [0, 0, 1, 1], [], []>} : vector<32x32xbf16>, vector<32x32xbf16>, vector<32x32xf32> -> vector<32x32xf32>
    %45 = vector.extract_strided_slice %22 {offsets = [0, 32], sizes = [32, 32], strides = [1, 1]} : vector<32x256xbf16> to vector<32x32xbf16>
    %46 = vector.extract_strided_slice %24 {offsets = [0, 32], sizes = [32, 32], strides = [1, 1]} : vector<32x256xbf16> to vector<32x32xbf16>
    %47 = vector.extract_strided_slice %26 {offsets = [0, 32], sizes = [32, 32], strides = [1, 1]} : vector<32x256xbf16> to vector<32x32xbf16>
    %cst_20 = arith.constant dense<0.000000e+00> : vector<32x32xf32>
    %48 = tpu.matmul %45, %46, %cst_20 {dimension_numbers = #tpu.dot_dimension_numbers<[1], [1], [0], [0], [0, 0, 1, 0], [], []>} : vector<32x32xbf16>, vector<32x32xbf16>, vector<32x32xf32> -> vector<32x32xf32>
    %49 = arith.addf %48, %27 : vector<32x32xf32>
    %cst_21 = arith.constant dense<0xFF800000> : vector<32xf32>
    %50 = vector.multi_reduction <maximumf>, %49, %cst_21 [1] : vector<32x32xf32> to vector<32xf32>
    %51 = vector.shape_cast %50 : vector<32xf32> to vector<32x1xf32>
    %52 = vector.broadcast %51 : vector<32x1xf32> to vector<32x32xf32>
    %53 = arith.subf %49, %52 : vector<32x32xf32>
    %54 = math.exp %53 : vector<32x32xf32>
    %cst_22 = arith.constant dense<0.000000e+00> : vector<32xf32>
    %55 = vector.multi_reduction <add>, %54, %cst_22 [1] : vector<32x32xf32> to vector<32xf32>
    %56 = vector.shape_cast %55 : vector<32xf32> to vector<32x1xf32>
    %57 = tpu.reciprocal %56 {approx = true} : vector<32x1xf32> -> vector<32x1xf32>
    %58 = vector.broadcast %57 : vector<32x1xf32> to vector<32x32xf32>
    %59 = arith.mulf %54, %58 : vector<32x32xf32>
    %60 = arith.truncf %59 : vector<32x32xf32> to vector<32x32xbf16>
    %cst_23 = arith.constant dense<0.000000e+00> : vector<32x32xf32>
    %61 = tpu.matmul %60, %47, %cst_23 {dimension_numbers = #tpu.dot_dimension_numbers<[1], [0], [0], [1], [0, 0, 1, 1], [], []>} : vector<32x32xbf16>, vector<32x32xbf16>, vector<32x32xf32> -> vector<32x32xf32>
    %62 = vector.extract_strided_slice %22 {offsets = [0, 64], sizes = [32, 32], strides = [1, 1]} : vector<32x256xbf16> to vector<32x32xbf16>
    %63 = vector.extract_strided_slice %24 {offsets = [0, 64], sizes = [32, 32], strides = [1, 1]} : vector<32x256xbf16> to vector<32x32xbf16>
    %64 = vector.extract_strided_slice %26 {offsets = [0, 64], sizes = [32, 32], strides = [1, 1]} : vector<32x256xbf16> to vector<32x32xbf16>
    %cst_24 = arith.constant dense<0.000000e+00> : vector<32x32xf32>
    %65 = tpu.matmul %62, %63, %cst_24 {dimension_numbers = #tpu.dot_dimension_numbers<[1], [1], [0], [0], [0, 0, 1, 0], [], []>} : vector<32x32xbf16>, vector<32x32xbf16>, vector<32x32xf32> -> vector<32x32xf32>
    %66 = arith.addf %65, %27 : vector<32x32xf32>
    %cst_25 = arith.constant dense<0xFF800000> : vector<32xf32>
    %67 = vector.multi_reduction <maximumf>, %66, %cst_25 [1] : vector<32x32xf32> to vector<32xf32>
    %68 = vector.shape_cast %67 : vector<32xf32> to vector<32x1xf32>
    %69 = vector.broadcast %68 : vector<32x1xf32> to vector<32x32xf32>
    %70 = arith.subf %66, %69 : vector<32x32xf32>
    %71 = math.exp %70 : vector<32x32xf32>
    %cst_26 = arith.constant dense<0.000000e+00> : vector<32xf32>
    %72 = vector.multi_reduction <add>, %71, %cst_26 [1] : vector<32x32xf32> to vector<32xf32>
    %73 = vector.shape_cast %72 : vector<32xf32> to vector<32x1xf32>
    %74 = tpu.reciprocal %73 {approx = true} : vector<32x1xf32> -> vector<32x1xf32>
    %75 = vector.broadcast %74 : vector<32x1xf32> to vector<32x32xf32>
    %76 = arith.mulf %71, %75 : vector<32x32xf32>
    %77 = arith.truncf %76 : vector<32x32xf32> to vector<32x32xbf16>
    %cst_27 = arith.constant dense<0.000000e+00> : vector<32x32xf32>
    %78 = tpu.matmul %77, %64, %cst_27 {dimension_numbers = #tpu.dot_dimension_numbers<[1], [0], [0], [1], [0, 0, 1, 1], [], []>} : vector<32x32xbf16>, vector<32x32xbf16>, vector<32x32xf32> -> vector<32x32xf32>
    %79 = vector.extract_strided_slice %22 {offsets = [0, 96], sizes = [32, 32], strides = [1, 1]} : vector<32x256xbf16> to vector<32x32xbf16>
    %80 = vector.extract_strided_slice %24 {offsets = [0, 96], sizes = [32, 32], strides = [1, 1]} : vector<32x256xbf16> to vector<32x32xbf16>
    %81 = vector.extract_strided_slice %26 {offsets = [0, 96], sizes = [32, 32], strides = [1, 1]} : vector<32x256xbf16> to vector<32x32xbf16>
    %cst_28 = arith.constant dense<0.000000e+00> : vector<32x32xf32>
    %82 = tpu.matmul %79, %80, %cst_28 {dimension_numbers = #tpu.dot_dimension_numbers<[1], [1], [0], [0], [0, 0, 1, 0], [], []>} : vector<32x32xbf16>, vector<32x32xbf16>, vector<32x32xf32> -> vector<32x32xf32>
    %83 = arith.addf %82, %27 : vector<32x32xf32>
    %cst_29 = arith.constant dense<0xFF800000> : vector<32xf32>
    %84 = vector.multi_reduction <maximumf>, %83, %cst_29 [1] : vector<32x32xf32> to vector<32xf32>
    %85 = vector.shape_cast %84 : vector<32xf32> to vector<32x1xf32>
    %86 = vector.broadcast %85 : vector<32x1xf32> to vector<32x32xf32>
    %87 = arith.subf %83, %86 : vector<32x32xf32>
    %88 = math.exp %87 : vector<32x32xf32>
    %cst_30 = arith.constant dense<0.000000e+00> : vector<32xf32>
    %89 = vector.multi_reduction <add>, %88, %cst_30 [1] : vector<32x32xf32> to vector<32xf32>
    %90 = vector.shape_cast %89 : vector<32xf32> to vector<32x1xf32>
    %91 = tpu.reciprocal %90 {approx = true} : vector<32x1xf32> -> vector<32x1xf32>
    %92 = vector.broadcast %91 : vector<32x1xf32> to vector<32x32xf32>
    %93 = arith.mulf %88, %92 : vector<32x32xf32>
    %94 = arith.truncf %93 : vector<32x32xf32> to vector<32x32xbf16>
    %cst_31 = arith.constant dense<0.000000e+00> : vector<32x32xf32>
    %95 = tpu.matmul %94, %81, %cst_31 {dimension_numbers = #tpu.dot_dimension_numbers<[1], [0], [0], [1], [0, 0, 1, 1], [], []>} : vector<32x32xbf16>, vector<32x32xbf16>, vector<32x32xf32> -> vector<32x32xf32>
    %96 = vector.extract_strided_slice %22 {offsets = [0, 128], sizes = [32, 32], strides = [1, 1]} : vector<32x256xbf16> to vector<32x32xbf16>
    %97 = vector.extract_strided_slice %24 {offsets = [0, 128], sizes = [32, 32], strides = [1, 1]} : vector<32x256xbf16> to vector<32x32xbf16>
    %98 = vector.extract_strided_slice %26 {offsets = [0, 128], sizes = [32, 32], strides = [1, 1]} : vector<32x256xbf16> to vector<32x32xbf16>
    %cst_32 = arith.constant dense<0.000000e+00> : vector<32x32xf32>
    %99 = tpu.matmul %96, %97, %cst_32 {dimension_numbers = #tpu.dot_dimension_numbers<[1], [1], [0], [0], [0, 0, 1, 0], [], []>} : vector<32x32xbf16>, vector<32x32xbf16>, vector<32x32xf32> -> vector<32x32xf32>
    %100 = arith.addf %99, %27 : vector<32x32xf32>
    %cst_33 = arith.constant dense<0xFF800000> : vector<32xf32>
    %101 = vector.multi_reduction <maximumf>, %100, %cst_33 [1] : vector<32x32xf32> to vector<32xf32>
    %102 = vector.shape_cast %101 : vector<32xf32> to vector<32x1xf32>
    %103 = vector.broadcast %102 : vector<32x1xf32> to vector<32x32xf32>
    %104 = arith.subf %100, %103 : vector<32x32xf32>
    %105 = math.exp %104 : vector<32x32xf32>
    %cst_34 = arith.constant dense<0.000000e+00> : vector<32xf32>
    %106 = vector.multi_reduction <add>, %105, %cst_34 [1] : vector<32x32xf32> to vector<32xf32>
    %107 = vector.shape_cast %106 : vector<32xf32> to vector<32x1xf32>
    %108 = tpu.reciprocal %107 {approx = true} : vector<32x1xf32> -> vector<32x1xf32>
    %109 = vector.broadcast %108 : vector<32x1xf32> to vector<32x32xf32>
    %110 = arith.mulf %105, %109 : vector<32x32xf32>
    %111 = arith.truncf %110 : vector<32x32xf32> to vector<32x32xbf16>
    %cst_35 = arith.constant dense<0.000000e+00> : vector<32x32xf32>
    %112 = tpu.matmul %111, %98, %cst_35 {dimension_numbers = #tpu.dot_dimension_numbers<[1], [0], [0], [1], [0, 0, 1, 1], [], []>} : vector<32x32xbf16>, vector<32x32xbf16>, vector<32x32xf32> -> vector<32x32xf32>
    %113 = vector.extract_strided_slice %22 {offsets = [0, 160], sizes = [32, 32], strides = [1, 1]} : vector<32x256xbf16> to vector<32x32xbf16>
    %114 = vector.extract_strided_slice %24 {offsets = [0, 160], sizes = [32, 32], strides = [1, 1]} : vector<32x256xbf16> to vector<32x32xbf16>
    %115 = vector.extract_strided_slice %26 {offsets = [0, 160], sizes = [32, 32], strides = [1, 1]} : vector<32x256xbf16> to vector<32x32xbf16>
    %cst_36 = arith.constant dense<0.000000e+00> : vector<32x32xf32>
    %116 = tpu.matmul %113, %114, %cst_36 {dimension_numbers = #tpu.dot_dimension_numbers<[1], [1], [0], [0], [0, 0, 1, 0], [], []>} : vector<32x32xbf16>, vector<32x32xbf16>, vector<32x32xf32> -> vector<32x32xf32>
    %117 = arith.addf %116, %27 : vector<32x32xf32>
    %cst_37 = arith.constant dense<0xFF800000> : vector<32xf32>
    %118 = vector.multi_reduction <maximumf>, %117, %cst_37 [1] : vector<32x32xf32> to vector<32xf32>
    %119 = vector.shape_cast %118 : vector<32xf32> to vector<32x1xf32>
    %120 = vector.broadcast %119 : vector<32x1xf32> to vector<32x32xf32>
    %121 = arith.subf %117, %120 : vector<32x32xf32>
    %122 = math.exp %121 : vector<32x32xf32>
    %cst_38 = arith.constant dense<0.000000e+00> : vector<32xf32>
    %123 = vector.multi_reduction <add>, %122, %cst_38 [1] : vector<32x32xf32> to vector<32xf32>
    %124 = vector.shape_cast %123 : vector<32xf32> to vector<32x1xf32>
    %125 = tpu.reciprocal %124 {approx = true} : vector<32x1xf32> -> vector<32x1xf32>
    %126 = vector.broadcast %125 : vector<32x1xf32> to vector<32x32xf32>
    %127 = arith.mulf %122, %126 : vector<32x32xf32>
    %128 = arith.truncf %127 : vector<32x32xf32> to vector<32x32xbf16>
    %cst_39 = arith.constant dense<0.000000e+00> : vector<32x32xf32>
    %129 = tpu.matmul %128, %115, %cst_39 {dimension_numbers = #tpu.dot_dimension_numbers<[1], [0], [0], [1], [0, 0, 1, 1], [], []>} : vector<32x32xbf16>, vector<32x32xbf16>, vector<32x32xf32> -> vector<32x32xf32>
    %130 = vector.extract_strided_slice %22 {offsets = [0, 192], sizes = [32, 32], strides = [1, 1]} : vector<32x256xbf16> to vector<32x32xbf16>
    %131 = vector.extract_strided_slice %24 {offsets = [0, 192], sizes = [32, 32], strides = [1, 1]} : vector<32x256xbf16> to vector<32x32xbf16>
    %132 = vector.extract_strided_slice %26 {offsets = [0, 192], sizes = [32, 32], strides = [1, 1]} : vector<32x256xbf16> to vector<32x32xbf16>
    %cst_40 = arith.constant dense<0.000000e+00> : vector<32x32xf32>
    %133 = tpu.matmul %130, %131, %cst_40 {dimension_numbers = #tpu.dot_dimension_numbers<[1], [1], [0], [0], [0, 0, 1, 0], [], []>} : vector<32x32xbf16>, vector<32x32xbf16>, vector<32x32xf32> -> vector<32x32xf32>
    %134 = arith.addf %133, %27 : vector<32x32xf32>
    %cst_41 = arith.constant dense<0xFF800000> : vector<32xf32>
    %135 = vector.multi_reduction <maximumf>, %134, %cst_41 [1] : vector<32x32xf32> to vector<32xf32>
    %136 = vector.shape_cast %135 : vector<32xf32> to vector<32x1xf32>
    %137 = vector.broadcast %136 : vector<32x1xf32> to vector<32x32xf32>
    %138 = arith.subf %134, %137 : vector<32x32xf32>
    %139 = math.exp %138 : vector<32x32xf32>
    %cst_42 = arith.constant dense<0.000000e+00> : vector<32xf32>
    %140 = vector.multi_reduction <add>, %139, %cst_42 [1] : vector<32x32xf32> to vector<32xf32>
    %141 = vector.shape_cast %140 : vector<32xf32> to vector<32x1xf32>
    %142 = tpu.reciprocal %141 {approx = true} : vector<32x1xf32> -> vector<32x1xf32>
    %143 = vector.broadcast %142 : vector<32x1xf32> to vector<32x32xf32>
    %144 = arith.mulf %139, %143 : vector<32x32xf32>
    %145 = arith.truncf %144 : vector<32x32xf32> to vector<32x32xbf16>
    %cst_43 = arith.constant dense<0.000000e+00> : vector<32x32xf32>
    %146 = tpu.matmul %145, %132, %cst_43 {dimension_numbers = #tpu.dot_dimension_numbers<[1], [0], [0], [1], [0, 0, 1, 1], [], []>} : vector<32x32xbf16>, vector<32x32xbf16>, vector<32x32xf32> -> vector<32x32xf32>
    %147 = vector.extract_strided_slice %22 {offsets = [0, 224], sizes = [32, 32], strides = [1, 1]} : vector<32x256xbf16> to vector<32x32xbf16>
    %148 = vector.extract_strided_slice %24 {offsets = [0, 224], sizes = [32, 32], strides = [1, 1]} : vector<32x256xbf16> to vector<32x32xbf16>
    %149 = vector.extract_strided_slice %26 {offsets = [0, 224], sizes = [32, 32], strides = [1, 1]} : vector<32x256xbf16> to vector<32x32xbf16>
    %cst_44 = arith.constant dense<0.000000e+00> : vector<32x32xf32>
    %150 = tpu.matmul %147, %148, %cst_44 {dimension_numbers = #tpu.dot_dimension_numbers<[1], [1], [0], [0], [0, 0, 1, 0], [], []>} : vector<32x32xbf16>, vector<32x32xbf16>, vector<32x32xf32> -> vector<32x32xf32>
    %151 = arith.addf %150, %27 : vector<32x32xf32>
    %cst_45 = arith.constant dense<0xFF800000> : vector<32xf32>
    %152 = vector.multi_reduction <maximumf>, %151, %cst_45 [1] : vector<32x32xf32> to vector<32xf32>
    %153 = vector.shape_cast %152 : vector<32xf32> to vector<32x1xf32>
    %154 = vector.broadcast %153 : vector<32x1xf32> to vector<32x32xf32>
    %155 = arith.subf %151, %154 : vector<32x32xf32>
    %156 = math.exp %155 : vector<32x32xf32>
    %cst_46 = arith.constant dense<0.000000e+00> : vector<32xf32>
    %157 = vector.multi_reduction <add>, %156, %cst_46 [1] : vector<32x32xf32> to vector<32xf32>
    %158 = vector.shape_cast %157 : vector<32xf32> to vector<32x1xf32>
    %159 = tpu.reciprocal %158 {approx = true} : vector<32x1xf32> -> vector<32x1xf32>
    %160 = vector.broadcast %159 : vector<32x1xf32> to vector<32x32xf32>
    %161 = arith.mulf %156, %160 : vector<32x32xf32>
    %162 = arith.truncf %161 : vector<32x32xf32> to vector<32x32xbf16>
    %cst_47 = arith.constant dense<0.000000e+00> : vector<32x32xf32>
    %163 = tpu.matmul %162, %149, %cst_47 {dimension_numbers = #tpu.dot_dimension_numbers<[1], [0], [0], [1], [0, 0, 1, 1], [], []>} : vector<32x32xbf16>, vector<32x32xbf16>, vector<32x32xf32> -> vector<32x32xf32>
    %164 = tpu.concatenate %44, %61, %78, %95, %112, %129, %146, %163 in 1 : vector<32x32xf32>, vector<32x32xf32>, vector<32x32xf32>, vector<32x32xf32>, vector<32x32xf32>, vector<32x32xf32>, vector<32x32xf32>, vector<32x32xf32> -> vector<32x256xf32>
    %165 = arith.truncf %164 : vector<32x256xf32> to vector<32x256xbf16>
    %c0_48 = arith.constant 0 : index
    %c0_49 = arith.constant 0 : index
    %166 = vector.load %arg8[%c0_48, %c0_49] : memref<256x256xbf16, #tpu.memory_space<vmem>>, vector<256x256xbf16>
    %cst_50 = arith.constant dense<0.000000e+00> : vector<32x256xf32>
    %167 = tpu.matmul %165, %166, %cst_50 {dimension_numbers = #tpu.dot_dimension_numbers<[1], [0], [0], [1], [0, 0, 1, 1], [], []>} : vector<32x256xbf16>, vector<256x256xbf16>, vector<32x256xf32> -> vector<32x256xf32>
    %c0_51 = arith.constant 0 : index
    %c0_52 = arith.constant 0 : index
    %168 = vector.load %arg9[%c0_51, %c0_52] : memref<1x256xf32, #tpu.memory_space<vmem>>, vector<1x256xf32>
    %169 = vector.broadcast %168 : vector<1x256xf32> to vector<32x256xf32>
    %170 = arith.addf %167, %169 : vector<32x256xf32>
    %171 = vector.extract_strided_slice %170 {offsets = [0, 0], sizes = [16, 256], strides = [1, 1]} : vector<32x256xf32> to vector<16x256xf32>
    %172 = vector.extract_strided_slice %170 {offsets = [16, 0], sizes = [16, 256], strides = [1, 1]} : vector<32x256xf32> to vector<16x256xf32>
    %173 = arith.truncf %171 : vector<16x256xf32> to vector<16x256xbf16>
    %c0_53 = arith.constant 0 : index
    %c0_54 = arith.constant 0 : index
    %174 = vector.load %arg10[%c0_53, %c0_54] : memref<512x64xbf16, #tpu.memory_space<vmem>>, vector<256x64xbf16>
    %cst_55 = arith.constant dense<0.000000e+00> : vector<16x64xf32>
    %175 = tpu.matmul %173, %174, %cst_55 {dimension_numbers = #tpu.dot_dimension_numbers<[1], [0], [0], [1], [0, 0, 1, 1], [], []>} : vector<16x256xbf16>, vector<256x64xbf16>, vector<16x64xf32> -> vector<16x64xf32>
    %176 = arith.truncf %172 : vector<16x256xf32> to vector<16x256xbf16>
    %c256 = arith.constant 256 : index
    %c0_56 = arith.constant 0 : index
    %177 = vector.load %arg10[%c256, %c0_56] : memref<512x64xbf16, #tpu.memory_space<vmem>>, vector<256x64xbf16>
    %cst_57 = arith.constant dense<0.000000e+00> : vector<16x64xf32>
    %178 = tpu.matmul %176, %177, %cst_57 {dimension_numbers = #tpu.dot_dimension_numbers<[1], [0], [0], [1], [0, 0, 1, 1], [], []>} : vector<16x256xbf16>, vector<256x64xbf16>, vector<16x64xf32> -> vector<16x64xf32>
    %179 = arith.addf %175, %178 : vector<16x64xf32>
    %c0_58 = arith.constant 0 : index
    %c0_59 = arith.constant 0 : index
    %180 = vector.load %arg11[%c0_58, %c0_59] : memref<1x64xf32, #tpu.memory_space<vmem>>, vector<1x64xf32>
    %181 = vector.broadcast %180 : vector<1x64xf32> to vector<16x64xf32>
    %182 = arith.addf %179, %181 : vector<16x64xf32>
    %cst_60 = arith.constant 0.000000e+00 : f32
    %183 = vector.broadcast %cst_60 : f32 to vector<16x64xf32>
    %184 = arith.maximumf %182, %183 : vector<16x64xf32>
    %185 = arith.truncf %184 : vector<16x64xf32> to vector<16x64xbf16>
    %c0_61 = arith.constant 0 : index
    %c0_62 = arith.constant 0 : index
    %186 = vector.load %arg12[%c0_61, %c0_62] : memref<64x128xbf16, #tpu.memory_space<vmem>>, vector<64x128xbf16>
    %cst_63 = arith.constant dense<0.000000e+00> : vector<16x128xf32>
    %187 = tpu.matmul %185, %186, %cst_63 {dimension_numbers = #tpu.dot_dimension_numbers<[1], [0], [0], [1], [0, 0, 1, 1], [], []>} : vector<16x64xbf16>, vector<64x128xbf16>, vector<16x128xf32> -> vector<16x128xf32>
    %c0_64 = arith.constant 0 : index
    %c0_65 = arith.constant 0 : index
    %188 = vector.load %arg13[%c0_64, %c0_65] : memref<1x128xf32, #tpu.memory_space<vmem>>, vector<1x128xf32>
    %189 = vector.broadcast %188 : vector<1x128xf32> to vector<16x128xf32>
    %190 = arith.addf %187, %189 : vector<16x128xf32>
    %191 = vector.shape_cast %190 : vector<16x128xf32> to vector<2x8x128xf32>
    %c0_66 = arith.constant 0 : index
    %c0_67 = arith.constant 0 : index
    %c0_68 = arith.constant 0 : index
    %192 = vector.load %arg14[%c0_66, %c0_67, %c0_68] : memref<2x8x128xf32, #tpu.memory_space<vmem>>, vector<2x8x128xf32>
    tpu.vector_store %arg14[%c0_66, %c0_67, %c0_68], %191 {strides = array<i32>} : memref<2x8x128xf32, #tpu.memory_space<vmem>>, vector<2x8x128xf32>,
    return
  }
  func.func @transform_0(%arg0: i32) -> (i32, i32, i32) {
    %c0_i32 = arith.constant 0 : i32
    %c0_i32_0 = arith.constant 0 : i32
    %c0_i32_1 = arith.constant 0 : i32
    return %arg0, %c0_i32, %c0_i32_0 : i32, i32, i32
  }
  func.func @transform_1(%arg0: i32) -> (i32, i32, i32) {
    %c0_i32 = arith.constant 0 : i32
    %c0_i32_0 = arith.constant 0 : i32
    %c0_i32_1 = arith.constant 0 : i32
    return %arg0, %c0_i32, %c0_i32_0 : i32, i32, i32
  }
  func.func @transform_2(%arg0: i32) -> (i32, i32) {
    %c0_i32 = arith.constant 0 : i32
    %c0_i32_0 = arith.constant 0 : i32
    %c0_i32_1 = arith.constant 0 : i32
    return %c0_i32, %c0_i32_0 : i32, i32
  }
  func.func @transform_3(%arg0: i32) -> (i32, i32) {
    %c0_i32 = arith.constant 0 : i32
    %c0_i32_0 = arith.constant 0 : i32
    %c0_i32_1 = arith.constant 0 : i32
    return %c0_i32, %c0_i32_0 : i32, i32
  }
  func.func @transform_4(%arg0: i32) -> (i32, i32) {
    %c0_i32 = arith.constant 0 : i32
    %c0_i32_0 = arith.constant 0 : i32
    %c0_i32_1 = arith.constant 0 : i32
    return %c0_i32, %c0_i32_0 : i32, i32
  }
  func.func @transform_5(%arg0: i32) -> (i32, i32) {
    %c0_i32 = arith.constant 0 : i32
    %c0_i32_0 = arith.constant 0 : i32
    %c0_i32_1 = arith.constant 0 : i32
    return %c0_i32, %c0_i32_0 : i32, i32
  }
  func.func @transform_6(%arg0: i32) -> (i32, i32) {
    %c0_i32 = arith.constant 0 : i32
    %c0_i32_0 = arith.constant 0 : i32
    %c0_i32_1 = arith.constant 0 : i32
    return %c0_i32, %c0_i32_0 : i32, i32
  }
  func.func @transform_7(%arg0: i32) -> (i32, i32) {
    %c0_i32 = arith.constant 0 : i32
    %c0_i32_0 = arith.constant 0 : i32
    %c0_i32_1 = arith.constant 0 : i32
    return %c0_i32, %c0_i32_0 : i32, i32
  }
  func.func @transform_8(%arg0: i32) -> (i32, i32) {
    %c0_i32 = arith.constant 0 : i32
    %c0_i32_0 = arith.constant 0 : i32
    %c0_i32_1 = arith.constant 0 : i32
    return %c0_i32, %c0_i32_0 : i32, i32
  }
  func.func @transform_9(%arg0: i32) -> (i32, i32) {
    %c0_i32 = arith.constant 0 : i32
    %c0_i32_0 = arith.constant 0 : i32
    %c0_i32_1 = arith.constant 0 : i32
    return %c0_i32, %c0_i32_0 : i32, i32
  }
  func.func @transform_10(%arg0: i32) -> (i32, i32) {
    %c0_i32 = arith.constant 0 : i32
    %c0_i32_0 = arith.constant 0 : i32
    %c0_i32_1 = arith.constant 0 : i32
    return %c0_i32, %c0_i32_0 : i32, i32
  }
  func.func @transform_11(%arg0: i32) -> (i32, i32) {
    %c0_i32 = arith.constant 0 : i32
    %c0_i32_0 = arith.constant 0 : i32
    %c0_i32_1 = arith.constant 0 : i32
    return %c0_i32, %c0_i32_0 : i32, i32
  }
  func.func @transform_12(%arg0: i32) -> (i32, i32) {
    %c0_i32 = arith.constant 0 : i32
    %c0_i32_0 = arith.constant 0 : i32
    %c0_i32_1 = arith.constant 0 : i32
    return %c0_i32, %c0_i32_0 : i32, i32
  }
  func.func @transform_13(%arg0: i32) -> (i32, i32, i32) {
    %c0_i32 = arith.constant 0 : i32
    %c0_i32_0 = arith.constant 0 : i32
    %c0_i32_1 = arith.constant 0 : i32
    return %arg0, %c0_i32, %c0_i32_0 : i32, i32, i32
  }
}

</mosaic_0001>

<bundles_post_ra>
// kernel: tpu_custom_call.1
= control target key start
LH: loop header
LB: loop body
LE: loop exit
PB: predicated region body
PF: predicated region fallthrough
CT: control target
= control target key end

     0   :  { %18 = vsyncpa [#allocation3], 0  ;;  %s5063_s0 = inlined_call_operand.vmem [shape: f32[2,8,256], index: 0, kind: input, shape index: {}]   ;;  %s5064_s1 = inlined_call_operand.vmem [shape: f32[2,8,256], index: 1, kind: input, shape index: {}]   ;;  %s5065_s2 = inlined_call_operand.hbm [shape: f32[8,256], index: 2, kind: input, shape index: {}]   ;;  %s5066_s3 = inlined_call_operand.hbm [shape: f32[8,256], index: 3, kind: input, shape index: {}]   ;;  %s5067_s4 = inlined_call_operand.vmem [shape: f32[32,32], index: 4, kind: input, shape index: {}]   ;;  %s5068_s5 = inlined_call_operand.hbm [shape: bf16[256,768], index: 5, kind: input, shape index: {}]   ;;  %s5069_s6 = inlined_call_operand.vmem [shape: f32[1,768], index: 6, kind: input, shape index: {}]   ;;  %s5070_s7 = inlined_call_operand.vmem [shape: bf16[256,256], index: 7, kind: input, shape index: {}]   ;;  %s5071_s8 = inlined_call_operand.vmem [shape: f32[1,256], index: 8, kind: input, shape index: {}]   ;;  %s5072_s9 = inlined_call_operand.vmem [shape: bf16[512,64], index: 9, kind: input, shape index: {}]   ;;  %s5073_s10 = inlined_call_operand.vmem [shape: f32[1,64], index: 10, kind: input, shape index: {}]   ;;  %s5074_s11 = inlined_call_operand.vmem [shape: bf16[64,128], index: 11, kind: input, shape index: {}]   ;;  %s5075_s12 = inlined_call_operand.vmem [shape: f32[1,128], index: 12, kind: input, shape index: {}]   ;;  %s5076_s13 = inlined_call_operand.hbm [shape: f32[2,8,128], index: 13, kind: output, shape index: {}]  }
   0x1   :  { %19 = vsyncpa [#allocation6], 0 }
   0x2   :  { %20 = vsyncpa [#allocation4], 0  ;;  %s4118_s25 = smov [#allocation5]   ;;  %s4119_s27 = smov [#allocation2]  }
   0x3   :  { %s41_s26 = sshll.u32 %s4118_s25, 4  ;;  %s31_s28 = sshll.u32 %s4119_s27, 4  ;;  %s42_s26 = int_to_ptr.vmem [resolvable:$true] %s41_s26  ;;  %s32_s28 = int_to_ptr.vmem [resolvable:$true] %s31_s28 }
   0x4   :  { %s4040_s29 = scalar_lea.vmem %s42_s26, 256  ;;  %p4045_p1 = scmp.lt.s32.totalorder %s42_s26, %s42_s26 }
   0x5   :  { %p4041_p0 = scmp.ne.s32.totalorder %s42_s26, %s4040_s29  ;;  %p4046_p2 = scmp.lt.s32.totalorder %s4040_s29, %s4040_s29 }
   0x7   :  { %p4047_p3 = por %p4046_p2, %p4045_p1 }
   0x9   :  { %p4048_p4 = pnand %p4047_p3, %p4041_p0 }
   0xb   :  { %4051 = shalt.err (!%p4048_p4)
}
   0xc   :  { %44 = dma.hbm_to_vmem [thread:$0]  %s5066_s3, 256, %s42_s26, [#allocation6]  }
   0xd   :  { %s4060_s15 = scalar_lea.vmem %s32_s28, 256  ;;  %p4065_p6 = scmp.lt.s32.totalorder %s32_s28, %s32_s28 }
   0xe   :  { %p4061_p5 = scmp.ne.s32.totalorder %s32_s28, %s4060_s15  ;;  %p4066_p7 = scmp.lt.s32.totalorder %s4060_s15, %s4060_s15 }
  0x10   :  { %p4067_p8 = por %p4066_p7, %p4065_p6 }
  0x12   :  { %p4068_p9 = pnand %p4067_p8, %p4061_p5 }
  0x14   :  { %4071 = shalt.err (!%p4068_p9)
}
  0x15   :  { %34 = dma.hbm_to_vmem [thread:$0]  %s5065_s2, 256, %s32_s28, [#allocation3]  }
  0x16   :  { %s4120_s18 = smov [#allocation7]  }
  0x17   :  { %s52_s19 = sshll.u32 %s4120_s18, 4  ;;  %s53_s19 = int_to_ptr.vmem [resolvable:$true] %s52_s19 }
  0x18   :  { %s4080_s20 = scalar_lea.vmem %s53_s19, 12288  ;;  %p4085_p11 = scmp.lt.s32.totalorder %s53_s19, %s53_s19 }
  0x19   :  { %p4081_p10 = scmp.ne.s32.totalorder %s53_s19, %s4080_s20  ;;  %p4086_p12 = scmp.lt.s32.totalorder %s4080_s20, %s4080_s20 }
  0x1b   :  { %p4087_p13 = por %p4086_p12, %p4085_p11 }
  0x1d   :  { %p4088_p0 = pnand %p4087_p13, %p4081_p10 }
  0x1f   :  { %4091 = shalt.err (!%p4088_p0)
}
  0x20   :  { %s4121_s3 = smov 384   ;;  %s4122_s21 = smov 24  }
  0x21   :  { %58 = dma.hbm_to_vmem [thread:$0]  %s5068_s5, 12288, %s53_s19, [#allocation6], %s4121_s3, %s4121_s3, %s4122_s21  }
  0x22   :  { %4112 = dma.done.wait [#allocation3], 256  }
  0x23   :  { %4113 = vsyncadd [#allocation3], 4294967040 }
  0x24   :  { %4114 = dma.done.wait [#allocation6], 12544  }
  0x25   :  { %4115 = vsyncadd [#allocation6], 4294954752  ;;  %v3672_v0 = vld [vmem:[#allocation7 + $0x15c] ss:$24 sps:$4 sm:$0xff]   ;;  %v3674_v1 = vld [vmem:[#allocation7 + $0x158] ss:$24 sps:$4 sm:$0xff]  }
  0x26   :  { %768 = vmatprep.subr.bf16.mxu1 %v3672_v0  ;;  %v3675_v2 = vld [vmem:[#allocation7 + $0x12c] ss:$24 sps:$4 sm:$0xff]   ;;  %v3677_v3 = vld [vmem:[#allocation7 + $0x128] ss:$24 sps:$4 sm:$0xff]   ;;  %v3678_v4 = vld [vmem:[#allocation7 + $0xfc] ss:$24 sps:$4 sm:$0xff]  }
  0x27   :  { %769 = vmatpush1.bf16.msra.mxu1 %v3674_v1  ;;  %v3680_v5 = vld [vmem:[#allocation7 + $0x154] ss:$24 sps:$4 sm:$0xff]   ;;  %v3683_v6 = vld [vmem:[#allocation7 + $0x150] ss:$24 sps:$4 sm:$0xff]   ;;  %v3686_v8 = vld [vmem:[#allocation7 + $0x124] ss:$24 sps:$4 sm:$0xff]  }
  0x28   :  { %770 = vmatprep.subr.bf16.mxu1 %v3675_v2  ;;  %715 = vmatprep.subr.bf16.mxu0 %v3680_v5  ;;  %v3682_v7 = vld [vmem:[#allocation7 + $0xf8] ss:$24 sps:$4 sm:$0xff]   ;;  %v3684_v10 = vld [vmem:[#allocation7 + $0xcc] ss:$24 sps:$4 sm:$0xff]   ;;  %v3688_v12 = vld [vmem:[#allocation7 + $0xc8] ss:$24 sps:$4 sm:$0xff]  }
  0x29   :  { %716 = vmatpush1.bf16.msra.mxu0 %v3683_v6  ;;  %v3689_v9 = vld [vmem:[#allocation7 + $0x120] ss:$24 sps:$4 sm:$0xff]   ;;  %v3692_v11 = vld [vmem:[#allocation7 + $0xf4] ss:$24 sps:$4 sm:$0xff]   ;;  %v3695_v13 = vld [vmem:[#allocation7 + $0xf0] ss:$24 sps:$4 sm:$0xff]  }
  0x2a   :  { %717 = vmatprep.subr.bf16.mxu0 %v3686_v8  ;;  %v3690_v14 = vld [vmem:[#allocation7 + $0x9c] ss:$24 sps:$4 sm:$0xff]   ;;  %v3694_v16 = vld [vmem:[#allocation7 + $0x98] ss:$24 sps:$4 sm:$0xff]   ;;  %v3696_v17 = vld [vmem:[#allocation7 + $0x6c] ss:$24 sps:$4 sm:$0xff]  }
  0x2b   :  { %771 = vmatpush1.bf16.msra.mxu1 %v3677_v3  ;;  %v3698_v15 = vld [vmem:[#allocation7 + $0xc4] ss:$24 sps:$4 sm:$0xff]   ;;  %v3701_v18 = vld [vmem:[#allocation7 + $0xc0] ss:$24 sps:$4 sm:$0xff]   ;;  %v3704_v19 = vld [vmem:[#allocation7 + $0x94] ss:$24 sps:$4 sm:$0xff]  }
  0x2c   :  { %772 = vmatprep.subr.bf16.mxu1 %v3678_v4  ;;  %v3700_v20 = vld [vmem:[#allocation7 + $0x68] ss:$24 sps:$4 sm:$0xff]   ;;  %v3702_v22 = vld [vmem:[#allocation7 + $0x3c] ss:$24 sps:$4 sm:$0xff]   ;;  %v3706_v24 = vld [vmem:[#allocation7 + $0x38] ss:$24 sps:$4 sm:$0xff]  }
  0x2d   :  { %718 = vmatpush1.bf16.msra.mxu0 %v3689_v9  ;;  %v3707_v21 = vld [vmem:[#allocation7 + $0x90] ss:$24 sps:$4 sm:$0xff]   ;;  %v3710_v23 = vld [vmem:[#allocation7 + $0x64] ss:$24 sps:$4 sm:$0xff]   ;;  %v3713_v26 = vld [vmem:[#allocation7 + $0x60] ss:$24 sps:$4 sm:$0xff]  }
  0x2e   :  { %719 = vmatprep.subr.bf16.mxu0 %v3692_v11  ;;  %v3708_v25 = vld [vmem:[#allocation7 + $0xc] ss:$24 sps:$4 sm:$0xff]   ;;  %v3712_v28 = vld [vmem:[#allocation7 + $0x8] ss:$24 sps:$4 sm:$0xff]   ;;  %v3714_v30 = vld [vmem:[#allocation7 + $0x2dc] ss:$24 sps:$4 sm:$0xff]  }
  0x2f   :  { %773 = vmatpush1.bf16.msra.mxu1 %v3682_v7  ;;  %v3716_v27 = vld [vmem:[#allocation7 + $0x34] ss:$24 sps:$4 sm:$0xff]   ;;  %v3719_v29 = vld [vmem:[#allocation7 + $0x30] ss:$24 sps:$4 sm:$0xff]   ;;  %v3722_v31 = vld [vmem:[#allocation7 + $0x4] ss:$24 sps:$4 sm:$0xff]  }
  0x30   :  { %774 = vmatprep.subr.bf16.mxu1 %v3684_v10  ;;  %v3718_v32 = vld [vmem:[#allocation7 + $0x2d8] ss:$24 sps:$4 sm:$0xff]   ;;  %v3720_v33 = vld [vmem:[#allocation7 + $0x2ac] ss:$24 sps:$4 sm:$0xff]   ;;  %v3724_v36 = vld [vmem:[#allocation7 + $0x2a8] ss:$24 sps:$4 sm:$0xff]  }
  0x31   :  { %720 = vmatpush1.bf16.msra.mxu0 %v3695_v13  ;;  %v3725_v34 = vld [vmem:[#allocation7] ss:$24 sps:$4 sm:$0xff]   ;;  %v3728_v35 = vld [vmem:[#allocation7 + $0x2d4] ss:$24 sps:$4 sm:$0xff]   ;;  %v3731_v37 = vld [vmem:[#allocation7 + $0x2d0] ss:$24 sps:$4 sm:$0xff]  }
  0x32   :  { %721 = vmatprep.subr.bf16.mxu0 %v3698_v15  ;;  %v3726_v38 = vld [vmem:[#allocation7 + $0x27c] ss:$24 sps:$4 sm:$0xff]   ;;  %v3730_v40 = vld [vmem:[#allocation7 + $0x278] ss:$24 sps:$4 sm:$0xff]   ;;  %v3732_v41 = vld [vmem:[#allocation7 + $0x24c] ss:$24 sps:$4 sm:$0xff]  }
  0x33   :  { %775 = vmatpush1.bf16.msra.mxu1 %v3688_v12  ;;  %v3734_v39 = vld [vmem:[#allocation7 + $0x2a4] ss:$24 sps:$4 sm:$0xff]   ;;  %v3737_v42 = vld [vmem:[#allocation7 + $0x2a0] ss:$24 sps:$4 sm:$0xff]   ;;  %v3740_v43 = vld [vmem:[#allocation7 + $0x274] ss:$24 sps:$4 sm:$0xff]  }
  0x34   :  { %776 = vmatprep.subr.bf16.mxu1 %v3690_v14  ;;  %v84_v44 = vld [vmem:[%s5063_s0 + $0x8] sm:$0xff]  ;;  %v86_v45 = vld [vmem:[%s5063_s0 + $0x18] sm:$0xff]  ;;  %v83_v0 = vld [vmem:[%s5063_s0] sm:$0xff]  ;;  %vm898_vm0 = vcmask 261120   ;;  %s4123_s25 = smov 96   ;;  %s4124_s26 = smov 64  }
  0x35   :  { %722 = vmatpush1.bf16.msra.mxu0 %v3701_v18  ;;  %v88_v46 = vld [vmem:[#allocation2 + $0x8] sm:$0xff]  ;;  %v3738_v52 = vld [vmem:[#allocation7 + $0x21c] ss:$24 sps:$4 sm:$0xff]   ;;  %v3742_v54 = vld [vmem:[#allocation7 + $0x218] ss:$24 sps:$4 sm:$0xff]   ;;  %s4125_s27 = smov 32  }
  0x36   :  { %723 = vmatprep.subr.bf16.mxu0 %v3704_v19  ;;  %v90_v47 = vadd.f32 %v88_v46, %v84_v44  ;;  %v92_v48 = vadd.f32 %v88_v46, %v86_v45  ;;  %v3736_v49 = vld [vmem:[#allocation7 + $0x248] ss:$24 sps:$4 sm:$0xff]   ;;  %v3746_v53 = vld [vmem:[#allocation7 + $0x244] ss:$24 sps:$4 sm:$0xff]   ;;  %v3752_v57 = vld [vmem:[#allocation7 + $0x214] ss:$24 sps:$4 sm:$0xff]  }
  0x37   :  { %777 = vmatpush1.bf16.msra.mxu1 %v3694_v16  ;;  %v3743_v50 = vld [vmem:[#allocation7 + $0x270] ss:$24 sps:$4 sm:$0xff]   ;;  %v3744_v55 = vld [vmem:[#allocation7 + $0x1ec] ss:$24 sps:$4 sm:$0xff]   ;;  %v3749_v56 = vld [vmem:[#allocation7 + $0x240] ss:$24 sps:$4 sm:$0xff]  }
  0x38   :  { %778 = vmatprep.subr.bf16.mxu1 %v3696_v17  ;;  %v4216_v51 = vpack.c.bf16 %v92_v48, %v90_v47  ;;  %v3748_v58 = vld [vmem:[#allocation7 + $0x1e8] ss:$24 sps:$4 sm:$0xff]   ;;  %v3750_v60 = vld [vmem:[#allocation7 + $0x1bc] ss:$24 sps:$4 sm:$0xff]   ;;  %v3754_v62 = vld [vmem:[#allocation7 + $0x1b8] ss:$24 sps:$4 sm:$0xff]  }
  0x39   :  { %724 = vmatpush1.bf16.msra.mxu0 %v3707_v21  ;;  %v3755_v59 = vld [vmem:[#allocation7 + $0x210] ss:$24 sps:$4 sm:$0xff]   ;;  %v3758_v61 = vld [vmem:[#allocation7 + $0x1e4] ss:$24 sps:$4 sm:$0xff]   ;;  %v3761_v63 = vld [vmem:[#allocation7 + $0x1e0] ss:$24 sps:$4 sm:$0xff]  }
  0x3a   :  { %725 = vmatprep.subr.bf16.mxu0 %v3710_v23  ;;  %800 = vmatprep.mubr.bf16.mxu1 %v4216_v51  ;;  %v85_v1 = vld [vmem:[%s5063_s0 + $0x10] sm:$0xff]  ;;  %v87_v2 = vld [vmem:[#allocation2] sm:$0xff]  ;;  %v94_v5 = vld [vmem:[%s5064_s1 + $0x8] sm:$0xff]  ;;  %vm2391_vm1 = vcmask 523264   ;;  %vm2396_vm2 = vcmask 785408   ;;  %vm4127_vm3 = vmmov 0  }
  0x3b   :  { %779 = vmatpush1.bf16.msra.mxu1 %v3700_v20  ;;  %747 = vmatprep.mubr.bf16.mxu0 %v4216_v51  ;;  %v3756_v3 = vld [vmem:[#allocation7 + $0x18c] ss:$24 sps:$4 sm:$0xff]   ;;  %v96_v6 = vld [vmem:[%s5064_s1 + $0x18] sm:$0xff]  ;;  %v3760_v8 = vld [vmem:[#allocation7 + $0x188] ss:$24 sps:$4 sm:$0xff]   ;;  %v89_v10 = vadd.f32 %v87_v2, %v83_v0  ;;  %v91_v11 = vadd.f32 %v87_v2, %v85_v1  ;;  %s4128_s16 = smov [#allocation8]  }
  0x3c   :  { %780 = vmatprep.subr.bf16.mxu1 %v3702_v22  ;;  %v3762_v4 = vld [vmem:[#allocation7 + $0x1b4] ss:$24 sps:$4 sm:$0xff]   ;;  %v98_v7 = vld [vmem:[#allocation5 + $0x8] sm:$0xff]  ;;  %v3764_v9 = vld [vmem:[#allocation7 + $0x1b0] ss:$24 sps:$4 sm:$0xff]   ;;  %s3118_s0 = sshll.u32 %s4128_s16, 4  ;;  %s3119_s0 = int_to_ptr.vmem [resolvable:$true] %s3118_s0 }
  0x3d   :  { %726 = vmatpush1.bf16.msra.mxu0 %v3713_v26  ;;  %v3765_v12 = vld [vmem:[#allocation7 + $0x184] ss:$24 sps:$4 sm:$0xff]   ;;  %v100_v13 = vadd.f32 %v98_v7, %v94_v5  ;;  %v102_v14 = vadd.f32 %v98_v7, %v96_v6  ;;  %v3767_v15 = vld [vmem:[#allocation7 + $0x180] ss:$24 sps:$4 sm:$0xff]   ;;  %v95_v17 = vld [vmem:[%s5064_s1 + $0x10] sm:$0xff]  ;;  %v4238_v19 = vpack.c.bf16 %v91_v11, %v89_v10  ;;  %p4097_p2 = scmp.lt.s32.totalorder %s3119_s0, %s3119_s0 }
  0x3e   :  { %727 = vmatprep.subr.bf16.mxu0 %v3716_v27  ;;  %v93_v16 = vld [vmem:[%s5064_s1] sm:$0xff]  ;;  %v97_v18 = vld [vmem:[#allocation5] sm:$0xff] }
  0x3f   :  { %781 = vmatpush1.bf16.msra.mxu1 %v3706_v24  ;;  %v4240_v20 = vpack.c.bf16 %v102_v14, %v100_v13  ;;  %v99_v21 = vadd.f32 %v97_v18, %v93_v16  ;;  %v101_v22 = vadd.f32 %v97_v18, %v95_v17  ;;  %v205_v24 = vlaneseq  ;;  %v3768_v11 = vld [vmem:[#allocation7 + $0x160] ss:$24 sps:$4 sm:$0xff]   ;;  %v3773_v13 = vld [vmem:[#allocation7 + $0x134] ss:$24 sps:$4 sm:$0xff]   ;;  %v3771_v14 = vld [vmem:[#allocation7 + $0x130] ss:$24 sps:$4 sm:$0xff]  }
  0x40   :  { %782 = vmatprep.subr.bf16.mxu1 %v3708_v25  ;;  %v3774_v16 = vld [vmem:[#allocation7 + $0x100] ss:$24 sps:$4 sm:$0xff]   ;;  %v3779_v17 = vld [vmem:[#allocation7 + $0xd4] ss:$24 sps:$4 sm:$0xff]   ;;  %v3777_v18 = vld [vmem:[#allocation7 + $0xd0] ss:$24 sps:$4 sm:$0xff]  }
  0x41   :  { %728 = vmatpush1.bf16.msra.mxu0 %v3719_v29  ;;  %v4244_v23 = vpack.c.bf16 %v101_v22, %v99_v21  ;;  %v4251_v25 = vshrl.u32 %v205_v24, 7  ;;  %v4259_v29 = vld [vmem:[%s5069_s6] sm:$0x3f]  ;;  %v3785_v24 = vld [vmem:[#allocation7 + $0x74] ss:$24 sps:$4 sm:$0xff]  }
  0x42   :  { %729 = vmatprep.subr.bf16.mxu0 %v3722_v31  ;;  %v3782_v21 = vld [vmem:[#allocation7 + $0xa4] ss:$24 sps:$4 sm:$0xff]   ;;  %v3780_v22 = vld [vmem:[#allocation7 + $0xa0] ss:$24 sps:$4 sm:$0xff]  }
  0x43   :  { %783 = vmatpush1.bf16.msra.mxu1 %v3712_v28  ;;  %v5078_v26 = vsub.s32 0, %v4251_v25  ;;  %v219_v27 = vsub.s32 3, %v4251_v25  ;;  %v5077_v28 = vsub.s32 1, %v4251_v25 }
  0x44   :  { %784 = vmatprep.subr.bf16.mxu1 %v3714_v30 }
  0x45   :  { %730 = vmatpush1.bf16.msra.mxu0 %v3725_v34  ;;  %v208_v31 = vrot.slane %v4259_v29, %v5078_v26  ;;  %v4270_v34 = vrot.slane %v4259_v29, %v5077_v28 }
  0x46   :  { %731 = vmatprep.subr.bf16.mxu0 %v3728_v35 }
  0x47   :  { %785 = vmatpush2.bf16.msra.mxu1 %v3718_v32 }
  0x48   :  { %786 = vmatprep.subr.bf16.mxu1 %v3720_v33  ;;  %v4265_v33 = vrot.slane %v4259_v29, %v219_v27  ;;  %v3783_v27 = vld [vmem:[#allocation7 + $0x70] ss:$24 sps:$4 sm:$0xff]  }
  0x49   :  { %732 = vmatpush2.bf16.msra.mxu0 %v3731_v37 }
  0x4a   :  { %733 = vmatprep.subr.bf16.mxu0 %v3734_v39 }
  0x4b   :  { %787 = vmatpush2.bf16.msra.mxu1 %v3724_v36 }
  0x4c   :  { %788 = vmatprep.subr.bf16.mxu1 %v3726_v38  ;;  %v215_v38 = vsub.s32 2, %v4251_v25 }
  0x4d   :  { %734 = vmatpush2.bf16.msra.mxu0 %v3737_v42 }
  0x4e   :  { %735 = vmatprep.subr.bf16.mxu0 %v3740_v43 }
  0x4f   :  { %789 = vmatpush2.bf16.msra.mxu1 %v3730_v40 }
  0x50   :  { %790 = vmatprep.subr.bf16.mxu1 %v3732_v41 }
  0x51   :  { %736 = vmatpush2.bf16.msra.mxu0 %v3743_v50 }
  0x52   :  { %737 = vmatprep.subr.bf16.mxu0 %v3746_v53 }
  0x53   :  { %791 = vmatpush2.bf16.msra.mxu1 %v3736_v49  ;;  %v216_v49 = vrot.slane %v4259_v29, %v215_v38  ;;  %v3797_v38 = vld [vmem:[#allocation7 + $0x2b4] ss:$24 sps:$4 sm:$0xff]  }
  0x54   :  { %792 = vmatprep.subr.bf16.mxu1 %v3738_v52 }
  0x55   :  { %738 = vmatpush2.bf16.msra.mxu0 %v3749_v56 }
  0x56   :  { %739 = vmatprep.subr.bf16.mxu0 %v3752_v57 }
  0x57   :  { %793 = vmatpush2.bf16.msra.mxu1 %v3742_v54 }
  0x58   :  { %794 = vmatprep.subr.bf16.mxu1 %v3744_v55 }
  0x59   :  { %740 = vmatpush2.bf16.msra.mxu0 %v3755_v59 }
  0x5a   :  { %741 = vmatprep.subr.bf16.mxu0 %v3758_v61 }
  0x5b   :  { %795 = vmatpush2.bf16.msra.mxu1 %v3748_v58 }
  0x5c   :  { %796 = vmatprep.subr.bf16.mxu1 %v3750_v60 }
  0x5d   :  { %742 = vmatpush2.bf16.msra.mxu0 %v3761_v63 }
  0x5e   :  { %743 = vmatprep.subr.bf16.mxu0 %v3762_v4 }
  0x5f   :  { %797 = vmatpush2.bf16.msra.mxu1 %v3754_v62 }
  0x60   :  { %798 = vmatprep.subr.bf16.mxu1 %v3756_v3 }
  0x61   :  { %744 = vmatpush2.bf16.msra.mxu0 %v3764_v9 }
  0x62   :  { %745 = vmatprep.subr.bf16.mxu0 %v3765_v12  ;;  %v3770_v12 = vld [vmem:[#allocation7 + $0x164] ss:$24 sps:$4 sm:$0xff]  }
  0x63   :  { %799 = vmatpush2.bf16.msra.mxu1 %v3760_v8 }
  0x65   :  { %746 = vmatpush2.bf16.msra.mxu0 %v3767_v15  ;;  %v3776_v15 = vld [vmem:[#allocation7 + $0x104] ss:$24 sps:$4 sm:$0xff]  }
  0x66   :  { %801 = vmatmul.mubr.bf16.vlgmr.msra.gmra.mxu1 %v4238_v19  ;;  %821 = vmatprep.subr.bf16.mxu0 %v3770_v12 }
  0x67   :  { %810 = vmatprep.mubr.bf16.mxu1 %v4240_v20 }
  0x68   :  { %748 = vmatmul.mubr.bf16.vlgmr.msra.gmra.mxu0 %v4238_v19 }
  0x69   :  { %757 = vmatprep.mubr.bf16.mxu0 %v4240_v20  ;;  %822 = vmatpush1.bf16.msra.mxu0 %v3768_v11 }
  0x6a   :  { %823 = vmatprep.subr.bf16.mxu0 %v3773_v13 }
  0x6d   :  { %824 = vmatpush1.bf16.msra.mxu0 %v3771_v14 }
  0x6e   :  { %811 = vmatmul.mubr.bf16.gmra.mxu1 %v4244_v23  ;;  %825 = vmatprep.subr.bf16.mxu0 %v3776_v15 }
  0x70   :  { %758 = vmatmul.mubr.bf16.gmra.mxu0 %v4244_v23 }
  0x71   :  { %853 = vmatprep.mubr.bf16.mxu0 %v4216_v51  ;;  %826 = vmatpush1.bf16.msra.mxu0 %v3774_v16 }
  0x72   :  { %827 = vmatprep.subr.bf16.mxu0 %v3779_v17 }
  0x75   :  { %828 = vmatpush1.bf16.msra.mxu0 %v3777_v18  ;;  %v223_v18 = vsub.s32 4, %v4251_v25 }
  0x76   :  { %829 = vmatprep.subr.bf16.mxu0 %v3782_v21 }
  0x79   :  { %830 = vmatpush1.bf16.msra.mxu0 %v3780_v22 }
  0x7a   :  { %831 = vmatprep.subr.bf16.mxu0 %v3785_v24 }
  0x7d   :  { %832 = vmatpush1.bf16.msra.mxu0 %v3783_v27 }
 0x126   :  { %v802_v30 = vpop.f32.mrf.mxu1 }
 0x127   :  { %v803_v62 = vadd.f32 %v802_v30, %v216_v49  ;;  %v3788_v30 = vld [vmem:[#allocation7 + $0x44] ss:$24 sps:$4 sm:$0xff]  }
 0x128   :  { %v804_v32 = vpop.f32.mrf.mxu1  ;;  %v749_v36 = vpop.f32.mrf.mxu0  ;;  %833 = vmatprep.subr.bf16.mxu0 %v3788_v30 }
 0x129   :  { %v750_v37 = vadd.f32 %v749_v36, %v208_v31  ;;  %v805_v41 = vadd.f32 %v804_v32, %v4265_v33  ;;  %v3791_v32 = vld [vmem:[#allocation7 + $0x14] ss:$24 sps:$4 sm:$0xff]   ;;  %v3794_v36 = vld [vmem:[#allocation7 + $0x2e4] ss:$24 sps:$4 sm:$0xff]  }
 0x12a   :  { %v806_v35 = vpop.f32.mrf.mxu1  ;;  %v751_v40 = vpop.f32.mrf.mxu0 }
 0x12b   :  { %v752_v43 = vadd.f32 %v751_v40, %v4270_v34  ;;  %v874_v47 = vmul.f32 0.17677669, %v750_v37  ;;  %v807_v55 = vadd.f32 %v806_v35, %v216_v49  ;;  %v3789_v35 = vld [vmem:[#allocation7 + $0x10] ss:$24 sps:$4 sm:$0xff]   ;;  %v3792_v37 = vld [vmem:[#allocation7 + $0x2e0] ss:$24 sps:$4 sm:$0xff]  }
 0x12c   :  { %v808_v39 = vpop.f32.mrf.mxu1  ;;  %v753_v45 = vpop.f32.mrf.mxu0  ;;  %v3800_v40 = vld [vmem:[#allocation7 + $0x284] ss:$24 sps:$4 sm:$0xff]  }
 0x12d   :  { %v809_v42 = vadd.f32 %v808_v39, %v4265_v33  ;;  %v754_v48 = vadd.f32 %v753_v45, %v208_v31  ;;  %v875_v52 = vmul.f32 0.17677669, %v752_v43  ;;  %v4290_v1 = vpack.c.bf16 %v807_v55, %v803_v62  ;;  %v3795_v39 = vld [vmem:[#allocation7 + $0x2b0] ss:$24 sps:$4 sm:$0xff]   ;;  %v3804_v45 = vld [vmem:[#allocation7 + $0x220] ss:$24 sps:$4 sm:$0xff]  }
 0x12e   :  { %v812_v44 = vpop.f32.mrf.mxu1  ;;  %v755_v51 = vpop.f32.mrf.mxu0  ;;  %v3801_v43 = vld [vmem:[#allocation7 + $0x250] ss:$24 sps:$4 sm:$0xff]  }
 0x12f   :  { %v4276_v46 = vpack.c.bf16 %v809_v42, %v805_v41  ;;  %v876_v53 = vmul.f32 0.17677669, %v754_v48  ;;  %v756_v54 = vadd.f32 %v755_v51, %v4270_v34  ;;  %v813_v57 = vadd.f32 %v812_v44, %v216_v49  ;;  %v3798_v41 = vld [vmem:[#allocation7 + $0x280] ss:$24 sps:$4 sm:$0xff]   ;;  %v3803_v42 = vld [vmem:[#allocation7 + $0x254] ss:$24 sps:$4 sm:$0xff]  }
 0x130   :  { %v4279_v50 = vpop.f32.mrf.mxu1  ;;  %v759_v61 = vpop.f32.mrf.mxu0  ;;  %v906_v7 = vsel %vm898_vm0, %v4290_v1, 0  ;;  %v3806_v44 = vld [vmem:[#allocation7 + $0x224] ss:$24 sps:$4 sm:$0xff]   ;;  %v3807_v48 = vld [vmem:[#allocation7 + $0x1f0] ss:$24 sps:$4 sm:$0xff]  }
 0x131   :  { %v4282_v59 = vpack.c.bf16 %v876_v53, %v874_v47  ;;  %v877_v60 = vmul.f32 0.17677669, %v756_v54  ;;  %v760_v5 = vadd.f32 %v759_v61, %v208_v31  ;;  %v3809_v47 = vld [vmem:[#allocation7 + $0x1f4] ss:$24 sps:$4 sm:$0xff]   ;;  %v3810_v51 = vld [vmem:[#allocation7 + $0x1c0] ss:$24 sps:$4 sm:$0xff]  }
 0x132   :  { %v816_v56 = vpop.f32.mrf.mxu1  ;;  %v4296_v3 = vpop.f32.mrf.mxu0  ;;  %v3813_v53 = vld [vmem:[#allocation7 + $0x190] ss:$24 sps:$4 sm:$0xff]  }
 0x133   :  { %v817_v58 = vadd.f32 %v816_v56, %v216_v49  ;;  %v4286_v0 = vpack.c.bf16 %v877_v60, %v875_v52  ;;  %3447 = vmatprep.mubr.msk.bf16.mxu1 %vm898_vm0, %v4282_v59  ;;  %v878_v8 = vmul.f32 0.17677669, %v760_v5  ;;  %v3812_v49 = vld [vmem:[#allocation7 + $0x1c4] ss:$24 sps:$4 sm:$0xff]   ;;  %v3815_v52 = vld [vmem:[#allocation7 + $0x194] ss:$24 sps:$4 sm:$0xff]  }
 0x134   :  { %v763_v4 = vpop.f32.mrf.mxu0  ;;  %v4309_v54 = vpop.f32.mrf.mxu1  ;;  %v4314_v55 = vld [vmem:[%s5067_s4 + $0x10] sm:$0xff]  ;;  %v4332_v62 = vld [vmem:[%s5067_s4 + $0x8] sm:$0xff] }
 0x135   :  { %v4284_v63 = vpack.c.bf16 %v817_v58, %v813_v57  ;;  %v764_v6 = vadd.f32 %v763_v4, %v208_v31  ;;  %v3786_v31 = vld [vmem:[#allocation7 + $0x40] ss:$24 sps:$4 sm:$0xff]  }
 0x136   :  { %834 = vmatpush1.bf16.msra.mxu0 %v3786_v31  ;;  %v4319_v57 = vld [vmem:[%s5067_s4] sm:$0xff]  ;;  %v4340_v11 = vpop.f32.mrf.mxu0 }
 0x137   :  { %3583 = vmatprep.subr.msk.bf16.mxu1 %vm898_vm0, %v4284_v63  ;;  %v909_v2 = vsel %vm898_vm0, %v4284_v63, 0  ;;  %v880_v9 = vmul.f32 0.17677669, %v764_v6  ;;  %835 = vmatprep.subr.bf16.mxu0 %v3791_v32 }
 0x138   :  { %3444 = vmatpush3.bf16.xpose.msra.mxu1 %v909_v2 }
 0x139   :  { %3584 = vmatprep.subr.msk.bf16.mxu1 %vm898_vm0, %v4290_v1  ;;  %v4302_v10 = vpack.c.bf16 %v880_v9, %v878_v8  ;;  %v227_v9 = vsub.s32 5, %v4251_v25 }
 0x13a   :  { %836 = vmatpush1.bf16.msra.mxu0 %v3789_v35 }
 0x13b   :  { %837 = vmatprep.subr.bf16.mxu0 %v3794_v36  ;;  %v4343_v14 = vrot.slane %v4259_v29, %v227_v9 }
 0x13e   :  { %838 = vmatpush2.bf16.msra.mxu0 %v3792_v37  ;;  %v224_v37 = vrot.slane %v4259_v29, %v223_v18 }
 0x13f   :  { %839 = vmatprep.subr.bf16.mxu0 %v3797_v38 }
 0x140   :  { %3446 = vmatpush3.bf16.xpose.msra.mxu1 %v906_v7 }
 0x142   :  { %840 = vmatpush2.bf16.msra.mxu0 %v3795_v39 }
 0x143   :  { %841 = vmatprep.subr.bf16.mxu0 %v3800_v40 }
 0x146   :  { %842 = vmatpush2.bf16.msra.mxu0 %v3798_v41 }
 0x147   :  { %3448 = vmatmul.mubr.msk.bf16.vlgmr.msra.gmra.mxu1 %vm898_vm0, %v4302_v10  ;;  %843 = vmatprep.subr.bf16.mxu0 %v3803_v42 }
 0x14a   :  { %844 = vmatpush2.bf16.msra.mxu0 %v3801_v43 }
 0x14b   :  { %845 = vmatprep.subr.bf16.mxu0 %v3806_v44 }
 0x14e   :  { %846 = vmatpush2.bf16.msra.mxu0 %v3804_v45 }
 0x14f   :  { %847 = vmatprep.subr.bf16.mxu0 %v3809_v47 }
 0x152   :  { %848 = vmatpush2.bf16.msra.mxu0 %v3807_v48 }
 0x153   :  { %849 = vmatprep.subr.bf16.mxu0 %v3812_v49 }
 0x156   :  { %850 = vmatpush2.bf16.msra.mxu0 %v3810_v51 }
 0x157   :  { %851 = vmatprep.subr.bf16.mxu0 %v3815_v52 }
 0x15a   :  { %852 = vmatpush2.bf16.msra.mxu0 %v3813_v53 }
 0x15d   :  { %854 = vmatmul.mubr.bf16.vlgmr.msra.gmra.mxu0 %v4238_v19 }
 0x15e   :  { %863 = vmatprep.mubr.bf16.mxu0 %v4240_v20  ;;  %v4325_v20 = vld [vmem:[%s5067_s4 + $0x18] sm:$0xff] }
 0x165   :  { %864 = vmatmul.mubr.bf16.gmra.mxu0 %v4244_v23 }
 0x207   :  { %v3449_v56 = vpop.f32.mrf.mxu1 }
 0x208   :  { %v954_v58 = vadd.f32 %v3449_v56, %v4314_v55 }
 0x209   :  { %v945_v19 = vpop.f32.mrf.mxu1 }
 0x20a   :  { %v946_v23 = vadd.f32 %v945_v19, %v4319_v57  ;;  %v966_v60 = vsel %vm898_vm0, %v954_v58, -inf }
 0x20b   :  { %967 = vmax.xlane.f32.xlu1 %v966_v60  ;;  %v3450_v61 = vpop.f32.mrf.mxu1 }
 0x20c   :  { %v957_v2 = vadd.f32 %v3450_v61, %v4325_v20  ;;  %v960_v4 = vsel %vm898_vm0, %v946_v23, -inf }
 0x20d   :  { %v948_v5 = vpop.f32.mrf.mxu1  ;;  %961 = vmax.xlane.f32.xlu0 %v960_v4 }
 0x20e   :  { %v949_v6 = vadd.f32 %v948_v5, %v4332_v62  ;;  %v969_v7 = vsel %vm898_vm0, %v957_v2, -inf }
 0x20f   :  { %970 = vmax.xlane.f32.xlu1 %v969_v7 }
 0x210   :  { %v963_v8 = vsel %vm898_vm0, %v949_v6, -inf }
 0x211   :  { %964 = vmax.xlane.f32.xlu0 %v963_v8 }
 0x21d   :  { %v855_v12 = vpop.f32.mrf.mxu0 }
 0x21e   :  { %v856_v45 = vadd.f32 %v855_v12, %v224_v37 }
 0x21f   :  { %v857_v16 = vpop.f32.mrf.mxu0 }
 0x220   :  { %v858_v30 = vadd.f32 %v857_v16, %v4343_v14 }
 0x221   :  { %v859_v24 = vpop.f32.mrf.mxu0 }
 0x222   :  { %v860_v47 = vadd.f32 %v859_v24, %v224_v37 }
 0x223   :  { %v861_v35 = vpop.f32.mrf.mxu0 }
 0x224   :  { %v862_v38 = vadd.f32 %v861_v35, %v4343_v14  ;;  %v4353_v52 = vpack.c.bf16 %v860_v47, %v856_v45 }
 0x225   :  { %v865_v40 = vpop.f32.mrf.mxu0 }
 0x226   :  { %v4349_v41 = vpack.c.bf16 %v862_v38, %v858_v30  ;;  %v866_v48 = vadd.f32 %v865_v40, %v224_v37 }
 0x227   :  { %v4351_v44 = vpop.f32.mrf.mxu0 }
 0x229   :  { %v869_v49 = vpop.f32.mrf.mxu0 }
 0x22a   :  { %v870_v51 = vadd.f32 %v869_v49, %v224_v37 }
 0x22c   :  { %v4355_v29 = vpack.c.bf16 %v870_v51, %v866_v48 }
 0x22e   :  { %3451 = vmatprep.subr.bf16.mxu1 %v4355_v29 }
 0x22f   :  { %3452 = vmatpush3.bf16.msra.mxu1 %v4355_v29 }
 0x230   :  { %3453 = vmatprep.subr.bf16.mxu1 %v4353_v52 }
 0x233   :  { %3454 = vmatpush3.bf16.msra.mxu1 %v4353_v52 }
 0x294   :  { %v968_v13 = vpop.xlane.xlu1 %967 }
 0x295   :  { %v974_v15 = vsub.f32 %v954_v58, %v968_v13 }
 0x296   :  { %v962_v17 = vpop.xlane.xlu0 %961 }
 0x297   :  { %v980_v21 = vmul.f32 1.442695, %v974_v15  ;;  %v972_v22 = vsub.f32 %v946_v23, %v962_v17 }
 0x298   :  { %v971_v27 = vpop.xlane.xlu1 %970 }
 0x299   :  { %3900 = vpow2.f32 %v980_v21  ;;  %v976_v31 = vmul.f32 1.442695, %v972_v22  ;;  %v975_v32 = vsub.f32 %v957_v2, %v971_v27 }
 0x29a   :  { %v965_v36 = vpop.xlane.xlu0 %964 }
 0x29b   :  { %3902 = vpow2.f32 %v976_v31  ;;  %v973_v39 = vsub.f32 %v949_v6, %v965_v36  ;;  %v982_v42 = vmul.f32 1.442695, %v975_v32 }
 0x29d   :  { %v978_v43 = vmul.f32 1.442695, %v973_v39 }
 0x29f   :  { %3904 = vpow2.f32 %v978_v43 }
 0x2a0   :  { %3906 = vpow2.f32 %v982_v42 }
 0x2a6   :  { %v3901_v53 = vpop.eup %3900 }
 0x2a7   :  { %v990_v56 = vsel %vm898_vm0, %v3901_v53, 0.0 }
 0x2a8   :  { %v3903_v58 = vpop.eup %3902  ;;  %991 = vadd.xlane.f32.xlu0 %v990_v56 }
 0x2a9   :  { %v984_v19 = vsel %vm898_vm0, %v3903_v58, 0.0 }
 0x2ac   :  { %v3905_v23 = vpop.eup %3904  ;;  %985 = vadd.xlane.f32.xlu0 %v984_v19 }
 0x2ad   :  { %v987_v60 = vsel %vm898_vm0, %v3905_v23, 0.0  ;;  %v3907_v61 = vpop.eup %3906 }
 0x2ae   :  { %988 = vadd.xlane.f32.xlu1 %v987_v60  ;;  %v993_v2 = vsel %vm898_vm0, %v3907_v61, 0.0 }
 0x2b2   :  { %994 = vadd.xlane.f32.xlu1 %v993_v2 }
 0x2c2   :  { %1071 = vrot.lane.b32.xlu0 %v4284_v63, %s4123_s25 }
 0x2c3   :  { %1069 = vrot.lane.b32.xlu1 %v4290_v1, %s4123_s25 }
 0x2c7   :  { %1063 = vrot.lane.b32.xlu1 %v4282_v59, %s4123_s25 }
 0x2cb   :  { %1065 = vrot.lane.b32.xlu1 %v4302_v10, %s4123_s25 }
 0x331   :  { %v992_v4 = vpop.xlane.xlu0 %991 }
 0x335   :  { %v986_v5 = vpop.xlane.xlu0 %985 }
 0x336   :  { %3908 = vrcp.f32 %v986_v5 }
 0x337   :  { %v989_v6 = vpop.xlane.xlu1 %988 }
 0x338   :  { %3910 = vrcp.f32 %v989_v6 }
 0x339   :  { %v1072_v7 = vpop.permute.xlu0 %1071  ;;  %3912 = vrcp.f32 %v992_v4 }
 0x33a   :  { %3585 = vmatprep.subr.msk.bf16.mxu1 %vm898_vm0, %v1072_v7  ;;  %v1083_v31 = vsel %vm898_vm0, %v1072_v7, 0 }
 0x33b   :  { %v995_v8 = vpop.xlane.xlu1 %994 }
 0x33c   :  { %3914 = vrcp.f32 %v995_v8 }
 0x33f   :  { %v1070_v17 = vpop.permute.xlu1 %1069 }
 0x340   :  { %v1080_v32 = vsel %vm898_vm0, %v1070_v17, 0 }
 0x343   :  { %v3909_v9 = vpop.eup %3908  ;;  %v1064_v30 = vpop.permute.xlu1 %1063 }
 0x344   :  { %v1000_v13 = vmul.f32 %v3909_v9, %v3903_v58 }
 0x345   :  { %v3911_v12 = vpop.eup %3910 }
 0x346   :  { %v1001_v15 = vmul.f32 %v3911_v12, %v3905_v23  ;;  %v3913_v16 = vpop.eup %3912 }
 0x347   :  { %v1002_v22 = vmul.f32 %v3913_v16, %v3901_v53  ;;  %v1066_v35 = vpop.permute.xlu1 %1065 }
 0x348   :  { %v1004_v18 = vpack.c.bf16 %v1001_v15, %v1000_v13 }
 0x349   :  { %v3915_v21 = vpop.eup %3914 }
 0x34a   :  { %3455 = vmatprep.mubr.msk.bf16.mxu1 %vm898_vm0, %v1004_v18  ;;  %v1003_v24 = vmul.f32 %v3915_v21, %v3907_v61 }
 0x34c   :  { %v1005_v27 = vpack.c.bf16 %v1003_v24, %v1002_v22 }
 0x34e   :  { %3456 = vmatmul.mubr.msk.bf16.vlgmr.msra.gmra.mxu1 %vm898_vm0, %v1005_v27 }
 0x34f   :  { %3460 = vmatpush3.bf16.xpose.msra.mxu1 %v1083_v31  ;;  %3463 = vmatprep.mubr.msk.bf16.mxu1 %vm898_vm0, %v1064_v30 }
 0x350   :  { %3586 = vmatprep.subr.msk.bf16.mxu1 %vm898_vm0, %v1070_v17 }
 0x357   :  { %3462 = vmatpush3.bf16.xpose.msra.mxu1 %v1080_v32 }
 0x35e   :  { %3464 = vmatmul.mubr.msk.bf16.vlgmr.msra.gmra.mxu1 %vm898_vm0, %v1066_v35 }
 0x40e   :  { %v4381_v36 = vpop.f32.mrf.mxu1 }
 0x410   :  { %v4383_v37 = vpop.f32.mrf.mxu1 }
 0x412   :  { %v4385_v38 = vpop.f32.mrf.mxu1 }
 0x414   :  { %v4387_v39 = vpop.f32.mrf.mxu1 }
 0x41e   :  { %v3465_v40 = vpop.f32.mrf.mxu1 }
 0x41f   :  { %v1128_v47 = vadd.f32 %v3465_v40, %v4314_v55 }
 0x420   :  { %v1119_v42 = vpop.f32.mrf.mxu1 }
 0x421   :  { %v1120_v43 = vadd.f32 %v1119_v42, %v4319_v57  ;;  %v1140_v58 = vsel %vm898_vm0, %v1128_v47, -inf }
 0x422   :  { %v3466_v45 = vpop.f32.mrf.mxu1 }
 0x423   :  { %v1134_v48 = vsel %vm898_vm0, %v1120_v43, -inf  ;;  %v1131_v53 = vadd.f32 %v3466_v45, %v4325_v20  ;;  %v819_v45 = vadd.f32 %v4309_v54, %v4265_v33 }
 0x424   :  { %v1122_v49 = vpop.f32.mrf.mxu1  ;;  %1135 = vmax.xlane.f32.xlu0 %v1134_v48 }
 0x425   :  { %v1123_v51 = vadd.f32 %v1122_v49, %v4332_v62  ;;  %v1143_v19 = vsel %vm898_vm0, %v1131_v53, -inf  ;;  %v815_v49 = vadd.f32 %v4279_v50, %v4265_v33 }
 0x427   :  { %v1137_v56 = vsel %vm898_vm0, %v1123_v51, -inf }
 0x428   :  { %1138 = vmax.xlane.f32.xlu1 %v1137_v56  ;;  %1141 = vmax.xlane.f32.xlu0 %v1140_v58  ;;  %v4429_v56 = vpack.c.bf16 %v819_v45, %v815_v49 }
 0x42c   :  { %1144 = vmax.xlane.f32.xlu0 %v1143_v19 }
 0x439   :  { %1182 = vrot.lane.b32.xlu1 %v4353_v52, %s4123_s25 }
 0x43d   :  { %1249 = vrot.lane.b32.xlu1 %v4284_v63, %s4124_s26 }
 0x4ad   :  { %v1136_v23 = vpop.xlane.xlu0 %1135 }
 0x4ae   :  { %v1146_v60 = vsub.f32 %v1120_v43, %v1136_v23 }
 0x4b0   :  { %v1150_v7 = vmul.f32 1.442695, %v1146_v60 }
 0x4b1   :  { %v1139_v61 = vpop.xlane.xlu1 %1138  ;;  %v1142_v2 = vpop.xlane.xlu0 %1141 }
 0x4b2   :  { %v1148_v4 = vsub.f32 %v1128_v47, %v1142_v2  ;;  %v1147_v5 = vsub.f32 %v1123_v51, %v1139_v61 }
 0x4b4   :  { %v1154_v6 = vmul.f32 1.442695, %v1148_v4  ;;  %v1152_v12 = vmul.f32 1.442695, %v1147_v5 }
 0x4b5   :  { %v1145_v8 = vpop.xlane.xlu0 %1144 }
 0x4b6   :  { %v1149_v9 = vsub.f32 %v1131_v53, %v1145_v8  ;;  %3916 = vpow2.f32 %v1154_v6  ;;  %v762_v8 = vadd.f32 %v4296_v3, %v4270_v34  ;;  %v4459_v3 = vpop.f32.mrf.mxu0 }
 0x4b7   :  { %3918 = vpow2.f32 %v1150_v7  ;;  %v1605_v7 = vsel %vm898_vm0, %v4429_v56, 0 }
 0x4b8   :  { %v1156_v13 = vmul.f32 1.442695, %v1149_v9  ;;  %v766_v9 = vadd.f32 %v4340_v11, %v4270_v34 }
 0x4ba   :  { %3920 = vpow2.f32 %v1156_v13  ;;  %v1602_v13 = vsel %vm898_vm0, %v4276_v46, 0 }
 0x4bb   :  { %3922 = vpow2.f32 %v1152_v12 }
 0x4c3   :  { %v3917_v15 = vpop.eup %3916 }
 0x4c4   :  { %v1164_v16 = vsel %vm898_vm0, %v3917_v15, 0.0  ;;  %v3919_v17 = vpop.eup %3918 }
 0x4c5   :  { %1165 = vadd.xlane.f32.xlu0 %v1164_v16  ;;  %v1158_v24 = vsel %vm898_vm0, %v3919_v17, 0.0  ;;  %v881_v16 = vmul.f32 0.17677669, %v766_v9 }
 0x4c7   :  { %v3921_v18 = vpop.eup %3920 }
 0x4c8   :  { %v1167_v21 = vsel %vm898_vm0, %v3921_v18, 0.0  ;;  %v3923_v22 = vpop.eup %3922 }
 0x4c9   :  { %1168 = vadd.xlane.f32.xlu1 %v1167_v21  ;;  %1159 = vadd.xlane.f32.xlu0 %v1158_v24  ;;  %v1161_v27 = vsel %vm898_vm0, %v3923_v22, 0.0 }
 0x4cd   :  { %1162 = vadd.xlane.f32.xlu1 %v1161_v27 }
 0x4de   :  { %1425 = vrot.lane.b32.xlu1 %v4284_v63, %s4125_s27  ;;  %v1183_v63 = vpop.permute.xlu1 %1182 }
 0x4df   :  { %1184 = vrot.lane.b32.xlu0 %v4355_v29, %s4123_s25 }
 0x4e2   :  { %1423 = vrot.lane.b32.xlu1 %v4290_v1, %s4125_s27  ;;  %v1250_v30 = vpop.permute.xlu1 %1249 }
 0x4e3   :  { %1247 = vrot.lane.b32.xlu0 %v4290_v1, %s4124_s26  ;;  %v1261_v5 = vsel %vm898_vm0, %v1250_v30, 0 }
 0x4e6   :  { %1245 = vrot.lane.b32.xlu1 %v4302_v10, %s4124_s26 }
 0x4e7   :  { %1243 = vrot.lane.b32.xlu0 %v4282_v59, %s4124_s26 }
 0x4ea   :  { %1421 = vrot.lane.b32.xlu1 %v4302_v10, %s4125_s27 }
 0x4eb   :  { %1419 = vrot.lane.b32.xlu0 %v4282_v59, %s4125_s27 }
 0x54e   :  { %v1166_v31 = vpop.xlane.xlu0 %1165 }
 0x552   :  { %v1169_v32 = vpop.xlane.xlu1 %1168  ;;  %v1160_v35 = vpop.xlane.xlu0 %1159 }
 0x553   :  { %3924 = vrcp.f32 %v1169_v32 }
 0x554   :  { %3926 = vrcp.f32 %v1160_v35 }
 0x555   :  { %3928 = vrcp.f32 %v1166_v31 }
 0x556   :  { %v1163_v1 = vpop.xlane.xlu1 %1162  ;;  %v1185_v40 = vpop.permute.xlu0 %1184 }
 0x557   :  { %3930 = vrcp.f32 %v1163_v1  ;;  %3467 = vmatprep.subr.bf16.mxu1 %v1185_v40 }
 0x558   :  { %3468 = vmatpush3.bf16.msra.mxu1 %v1185_v40 }
 0x559   :  { %3469 = vmatprep.subr.bf16.mxu1 %v1183_v63 }
 0x55a   :  { %v1426_v42 = vpop.permute.xlu1 %1425  ;;  %v1248_v43 = vpop.permute.xlu0 %1247 }
 0x55b   :  { %v1437_v10 = vsel %vm898_vm0, %v1426_v42, 0  ;;  %3589 = vmatprep.subr.msk.bf16.mxu0 %vm898_vm0, %v1426_v42  ;;  %v1258_v12 = vsel %vm898_vm0, %v1248_v43, 0 }
 0x55c   :  { %3492 = vmatpush3.bf16.xpose.msra.mxu0 %v1437_v10  ;;  %3470 = vmatpush3.bf16.msra.mxu1 %v1183_v63 }
 0x55d   :  { %3587 = vmatprep.subr.msk.bf16.mxu1 %vm898_vm0, %v1250_v30 }
 0x55e   :  { %v1424_v59 = vpop.permute.xlu1 %1423  ;;  %v1244_v47 = vpop.permute.xlu0 %1243 }
 0x55f   :  { %3590 = vmatprep.subr.msk.bf16.mxu0 %vm898_vm0, %v1424_v59  ;;  %v1434_v58 = vsel %vm898_vm0, %v1424_v59, 0 }
 0x560   :  { %v3925_v48 = vpop.eup %3924 }
 0x561   :  { %v3927_v51 = vpop.eup %3926  ;;  %v1177_v60 = vmul.f32 %v3925_v48, %v3921_v18 }
 0x562   :  { %v3929_v53 = vpop.eup %3928  ;;  %v1420_v19 = vpop.permute.xlu0 %1419  ;;  %v1174_v61 = vmul.f32 %v3927_v51, %v3919_v17 }
 0x563   :  { %3495 = vmatprep.mubr.msk.bf16.mxu0 %vm898_vm0, %v1420_v19  ;;  %v1246_v54 = vpop.permute.xlu1 %1245  ;;  %v1176_v4 = vmul.f32 %v3929_v53, %v3917_v15  ;;  %v879_v15 = vmul.f32 0.17677669, %v762_v8 }
 0x564   :  { %v3931_v23 = vpop.eup %3930  ;;  %3494 = vmatpush3.bf16.xpose.msra.mxu0 %v1434_v58 }
 0x565   :  { %3591 = vmatprep.subr.msk.bf16.mxu0 %vm898_vm0, %v4429_v56  ;;  %v1175_v2 = vmul.f32 %v3931_v23, %v3923_v22  ;;  %v1179_v50 = vpack.c.bf16 %v1177_v60, %v1176_v4  ;;  %v4454_v17 = vpack.c.bf16 %v881_v16, %v879_v15 }
 0x567   :  { %v1178_v33 = vpack.c.bf16 %v1175_v2, %v1174_v61  ;;  %v1422_v6 = vpop.permute.xlu1 %1421 }
 0x569   :  { %3471 = vmatprep.mubr.msk.bf16.mxu1 %vm898_vm0, %v1178_v33 }
 0x56a   :  { %3472 = vmatmul.mubr.msk.bf16.vlgmr.msra.gmra.mxu1 %vm898_vm0, %v1179_v50 }
 0x56b   :  { %3476 = vmatpush3.bf16.xpose.msra.mxu1 %v1261_v5  ;;  %3479 = vmatprep.mubr.msk.bf16.mxu1 %vm898_vm0, %v1244_v47 }
 0x56c   :  { %3588 = vmatprep.subr.msk.bf16.mxu1 %vm898_vm0, %v1248_v43  ;;  %3496 = vmatmul.mubr.msk.bf16.vlgmr.msra.gmra.mxu0 %vm898_vm0, %v1422_v6 }
 0x56d   :  { %3508 = vmatpush3.bf16.xpose.msra.mxu0 %v1605_v7  ;;  %3511 = vmatprep.mubr.msk.bf16.mxu0 %vm898_vm0, %v4286_v0 }
 0x56e   :  { %3592 = vmatprep.subr.msk.bf16.mxu0 %vm898_vm0, %v4276_v46 }
 0x573   :  { %3478 = vmatpush3.bf16.xpose.msra.mxu1 %v1258_v12 }
 0x575   :  { %3510 = vmatpush3.bf16.xpose.msra.mxu0 %v1602_v13 }
 0x57a   :  { %3480 = vmatmul.mubr.msk.bf16.vlgmr.msra.gmra.mxu1 %vm898_vm0, %v1246_v54 }
 0x57c   :  { %3512 = vmatmul.mubr.msk.bf16.vlgmr.msra.gmra.mxu0 %vm898_vm0, %v4454_v17 }
 0x62a   :  { %v4461_v18 = vpop.f32.mrf.mxu1 }
 0x62c   :  { %v3497_v34 = vpop.f32.mrf.mxu0  ;;  %v4463_v11 = vpop.f32.mrf.mxu1 }
 0x62d   :  { %v1482_v33 = vadd.f32 %v3497_v34, %v4314_v55 }
 0x62e   :  { %v1473_v21 = vpop.f32.mrf.mxu0  ;;  %v4465_v22 = vpop.f32.mrf.mxu1 }
 0x62f   :  { %v3642_v24 = vpack.i.bf16 %v4465_v22, %v4461_v18  ;;  %v1474_v54 = vadd.f32 %v1473_v21, %v4319_v57  ;;  %v1494_v8 = vsel %vm898_vm0, %v1482_v33, -inf }
 0x630   :  { %v3498_v27 = vpop.f32.mrf.mxu0  ;;  %v4469_v63 = vpop.f32.mrf.mxu1 }
 0x631   :  { %v3617_v30 = vpack.i.bf16 %v4469_v63, %v4463_v11  ;;  %v1485_v19 = vadd.f32 %v3498_v27, %v4325_v20  ;;  %v1488_v50 = vsel %vm898_vm0, %v1474_v54, -inf }
 0x632   :  { %v1476_v31 = vpop.f32.mrf.mxu0 }
 0x633   :  { %v1477_v32 = vadd.f32 %v1476_v31, %v4332_v62  ;;  %v1497_v4 = vsel %vm898_vm0, %v1485_v19, -inf }
 0x635   :  { %v1491_v35 = vsel %vm898_vm0, %v1477_v32, -inf }
 0x636   :  { %1492 = vmax.xlane.f32.xlu1 %v1491_v35 }
 0x63a   :  { %v3481_v1 = vpop.f32.mrf.mxu1 }
 0x63b   :  { %v4476_v40 = vadd.f32 %v3481_v1, %v4314_v55 }
 0x63c   :  { %v1297_v42 = vpop.f32.mrf.mxu1  ;;  %v3513_v10 = vpop.f32.mrf.mxu0 }
 0x63d   :  { %v4479_v43 = vadd.f32 %v1297_v42, %v4319_v57  ;;  %v1318_v59 = vsel %vm898_vm0, %v4476_v40, -inf  ;;  %v1650_v12 = vadd.f32 %v3513_v10, %v4314_v55 }
 0x63e   :  { %1319 = vmax.xlane.f32.xlu0 %v1318_v59  ;;  %v3482_v45 = vpop.f32.mrf.mxu1  ;;  %v1641_v47 = vpop.f32.mrf.mxu0 }
 0x63f   :  { %v4484_v51 = vadd.f32 %v3482_v45, %v4325_v20  ;;  %v1312_v58 = vsel %vm898_vm0, %v4479_v43, -inf  ;;  %v1642_v7 = vadd.f32 %v1641_v47, %v4319_v57  ;;  %v1662_v15 = vsel %vm898_vm0, %v1650_v12, -inf }
 0x640   :  { %v1300_v48 = vpop.f32.mrf.mxu1  ;;  %v3514_v49 = vpop.f32.mrf.mxu0 }
 0x641   :  { %v4487_v53 = vadd.f32 %v1300_v48, %v4332_v62  ;;  %v1321_v61 = vsel %vm898_vm0, %v4484_v51, -inf  ;;  %v1653_v5 = vadd.f32 %v3514_v49, %v4325_v20  ;;  %v1656_v13 = vsel %vm898_vm0, %v1642_v7, -inf }
 0x642   :  { %1313 = vmax.xlane.f32.xlu0 %v1312_v58  ;;  %v1644_v60 = vpop.f32.mrf.mxu0 }
 0x643   :  { %v1315_v23 = vsel %vm898_vm0, %v4487_v53, -inf  ;;  %v1645_v2 = vadd.f32 %v1644_v60, %v4332_v62  ;;  %v1665_v9 = vsel %vm898_vm0, %v1653_v5, -inf }
 0x644   :  { %1316 = vmax.xlane.f32.xlu1 %v1315_v23 }
 0x645   :  { %v1659_v6 = vsel %vm898_vm0, %v1645_v2, -inf }
 0x646   :  { %1322 = vmax.xlane.f32.xlu0 %v1321_v61 }
 0x648   :  { %1498 = vmax.xlane.f32.xlu1 %v1497_v4 }
 0x64a   :  { %1489 = vmax.xlane.f32.xlu0 %v1488_v50 }
 0x64c   :  { %1660 = vmax.xlane.f32.xlu1 %v1659_v6 }
 0x64e   :  { %1495 = vmax.xlane.f32.xlu0 %v1494_v8 }
 0x650   :  { %1666 = vmax.xlane.f32.xlu1 %v1665_v9 }
 0x652   :  { %1657 = vmax.xlane.f32.xlu0 %v1656_v13 }
 0x656   :  { %1663 = vmax.xlane.f32.xlu0 %v1662_v15 }
 0x6bf   :  { %v1493_v20 = vpop.xlane.xlu1 %1492 }
 0x6c0   :  { %v1501_v16 = vsub.f32 %v1477_v32, %v1493_v20 }
 0x6c2   :  { %v1506_v34 = vmul.f32 1.442695, %v1501_v16 }
 0x6c4   :  { %3932 = vpow2.f32 %v1506_v34 }
 0x6c7   :  { %v1320_v21 = vpop.xlane.xlu0 %1319 }
 0x6c8   :  { %v1326_v9 = vsub.f32 %v4476_v40, %v1320_v21 }
 0x6cb   :  { %v1314_v27 = vpop.xlane.xlu0 %1313 }
 0x6cc   :  { %v1324_v20 = vsub.f32 %v4479_v43, %v1314_v27 }
 0x6cd   :  { %v4509_v31 = vpop.xlane.xlu1 %1316 }
 0x6ce   :  { %v1328_v40 = vmul.f32 1.442695, %v1324_v20 }
 0x6cf   :  { %v4511_v35 = vpop.xlane.xlu0 %1322 }
 0x6d1   :  { %v4513_v1 = vpop.eup %3932  ;;  %v1499_v42 = vpop.xlane.xlu1 %1498 }
 0x6d2   :  { %v1503_v55 = vsub.f32 %v1485_v19, %v1499_v42  ;;  %v1515_v10 = vsel %vm898_vm0, %v4513_v1, 0.0 }
 0x6d3   :  { %1516 = vadd.xlane.f32.xlu1 %v1515_v10  ;;  %v1490_v59 = vpop.xlane.xlu0 %1489 }
 0x6d4   :  { %v1510_v45 = vmul.f32 1.442695, %v1503_v55  ;;  %v1500_v47 = vsub.f32 %v1474_v54, %v1490_v59 }
 0x6d5   :  { %v1661_v32 = vpop.xlane.xlu1 %1660 }
 0x6d6   :  { %3934 = vpow2.f32 %v1510_v45  ;;  %v1504_v48 = vmul.f32 1.442695, %v1500_v47  ;;  %v1669_v49 = vsub.f32 %v1645_v2, %v1661_v32  ;;  %v1332_v2 = vmul.f32 1.442695, %v1326_v9 }
 0x6d7   :  { %v1496_v58 = vpop.xlane.xlu0 %1495 }
 0x6d8   :  { %3936 = vpow2.f32 %v1504_v48  ;;  %v1674_v23 = vmul.f32 1.442695, %v1669_v49  ;;  %v1502_v60 = vsub.f32 %v1482_v33, %v1496_v58 }
 0x6d9   :  { %v1667_v61 = vpop.xlane.xlu1 %1666 }
 0x6da   :  { %3938 = vpow2.f32 %v1674_v23  ;;  %v1508_v4 = vmul.f32 1.442695, %v1502_v60  ;;  %v1671_v50 = vsub.f32 %v1653_v5, %v1667_v61  ;;  %v1327_v23 = vsub.f32 %v4484_v51, %v4511_v35 }
 0x6db   :  { %v1658_v19 = vpop.xlane.xlu0 %1657  ;;  %v1325_v60 = vsub.f32 %v4487_v53, %v4509_v31 }
 0x6dc   :  { %3940 = vpow2.f32 %v1508_v4  ;;  %v1678_v6 = vmul.f32 1.442695, %v1671_v50  ;;  %v1668_v8 = vsub.f32 %v1642_v7, %v1658_v19  ;;  %v1334_v61 = vmul.f32 1.442695, %v1327_v23 }
 0x6dd   :  { %v1330_v4 = vmul.f32 1.442695, %v1325_v60 }
 0x6de   :  { %3942 = vpow2.f32 %v1678_v6  ;;  %v1672_v54 = vmul.f32 1.442695, %v1668_v8 }
 0x6df   :  { %v1664_v13 = vpop.xlane.xlu0 %1663 }
 0x6e0   :  { %3944 = vpow2.f32 %v1672_v54  ;;  %v1670_v15 = vsub.f32 %v1650_v12, %v1664_v13 }
 0x6e2   :  { %v1676_v16 = vmul.f32 1.442695, %v1670_v15 }
 0x6e3   :  { %v4519_v33 = vpop.eup %3934 }
 0x6e4   :  { %3946 = vpow2.f32 %v1676_v16  ;;  %v1521_v5 = vsel %vm898_vm0, %v4519_v33, 0.0 }
 0x6e5   :  { %v4523_v34 = vpop.eup %3936  ;;  %1522 = vadd.xlane.f32.xlu1 %v1521_v5  ;;  %3948 = vpow2.f32 %v1332_v2 }
 0x6e6   :  { %v1512_v7 = vsel %vm898_vm0, %v4523_v34, 0.0  ;;  %3950 = vpow2.f32 %v1328_v40 }
 0x6e7   :  { %v4527_v21 = vpop.eup %3938  ;;  %1513 = vadd.xlane.f32.xlu0 %v1512_v7  ;;  %3952 = vpow2.f32 %v1334_v61 }
 0x6e8   :  { %v1683_v43 = vsel %vm898_vm0, %v4527_v21, 0.0  ;;  %3954 = vpow2.f32 %v1330_v4 }
 0x6e9   :  { %v4531_v12 = vpop.eup %3940  ;;  %1684 = vadd.xlane.f32.xlu1 %v1683_v43 }
 0x6ea   :  { %v1518_v27 = vsel %vm898_vm0, %v4531_v12, 0.0 }
 0x6eb   :  { %v4535_v42 = vpop.eup %3942  ;;  %1519 = vadd.xlane.f32.xlu0 %v1518_v27 }
 0x6ec   :  { %v1689_v55 = vsel %vm898_vm0, %v4535_v42, 0.0 }
 0x6ed   :  { %v4539_v10 = vpop.eup %3944  ;;  %1690 = vadd.xlane.f32.xlu1 %v1689_v55 }
 0x6ee   :  { %v1680_v59 = vsel %vm898_vm0, %v4539_v10, 0.0 }
 0x6ef   :  { %1681 = vadd.xlane.f32.xlu0 %v1680_v59 }
 0x6f1   :  { %v4543_v45 = vpop.eup %3946 }
 0x6f2   :  { %v1686_v47 = vsel %vm898_vm0, %v4543_v45, 0.0  ;;  %v4547_v32 = vpop.eup %3948 }
 0x6f3   :  { %1687 = vadd.xlane.f32.xlu0 %v1686_v47  ;;  %v1342_v48 = vsel %vm898_vm0, %v4547_v32, 0.0  ;;  %v4551_v49 = vpop.eup %3950 }
 0x6f4   :  { %v1336_v58 = vsel %vm898_vm0, %v4551_v49, 0.0  ;;  %v3953_v51 = vpop.eup %3952 }
 0x6f5   :  { %v1345_v53 = vsel %vm898_vm0, %v3953_v51, 0.0  ;;  %v3955_v31 = vpop.eup %3954 }
 0x6f7   :  { %1343 = vadd.xlane.f32.xlu0 %v1342_v48 }
 0x6fb   :  { %1337 = vadd.xlane.f32.xlu0 %v1336_v58 }
 0x6fe   :  { %1358 = vrot.lane.b32.xlu1 %v4353_v52, %s4124_s26 }
 0x702   :  { %1536 = vrot.lane.b32.xlu1 %v4355_v29, %s4125_s27 }
 0x711   :  { %1360 = vrot.lane.b32.xlu0 %v4355_v29, %s4124_s26  ;;  %v1339_v29 = vsel %vm898_vm0, %v3955_v31, 0.0 }
 0x715   :  { %1767 = vrot.lane.b32.xlu0 %v4429_v56, %s4123_s25 }
 0x719   :  { %1945 = vrot.lane.b32.xlu0 %v4429_v56, %s4124_s26 }
 0x71d   :  { %1761 = vrot.lane.b32.xlu0 %v4454_v17, %s4123_s25 }
 0x721   :  { %1939 = vrot.lane.b32.xlu0 %v4286_v0, %s4124_s26 }
 0x726   :  { %1346 = vadd.xlane.f32.xlu1 %v1345_v53 }
 0x72a   :  { %1340 = vadd.xlane.f32.xlu1 %v1339_v29 }
 0x73b   :  { %1534 = vrot.lane.b32.xlu1 %v4353_v52, %s4125_s27 }
 0x73f   :  { %1765 = vrot.lane.b32.xlu1 %v4276_v46, %s4123_s25 }
 0x743   :  { %1759 = vrot.lane.b32.xlu1 %v4286_v0, %s4123_s25 }
 0x747   :  { %1943 = vrot.lane.b32.xlu1 %v4276_v46, %s4124_s26 }
 0x74b   :  { %1941 = vrot.lane.b32.xlu1 %v4454_v17, %s4124_s26 }
 0x75c   :  { %v1517_v50 = vpop.xlane.xlu1 %1516 }
 0x75d   :  { %3956 = vrcp.f32 %v1517_v50 }
 0x76a   :  { %v3957_v58 = vpop.eup %3956 }
 0x76e   :  { %v1523_v6 = vpop.xlane.xlu1 %1522 }
 0x770   :  { %v1514_v35 = vpop.xlane.xlu0 %1513 }
 0x771   :  { %3958 = vrcp.f32 %v1514_v35 }
 0x772   :  { %v1685_v9 = vpop.xlane.xlu1 %1684 }
 0x774   :  { %v1520_v19 = vpop.xlane.xlu0 %1519 }
 0x776   :  { %v1691_v13 = vpop.xlane.xlu1 %1690 }
 0x778   :  { %v1682_v8 = vpop.xlane.xlu0 %1681 }
 0x77a   :  { %v1359_v2 = vpop.permute.xlu1 %1358 }
 0x77c   :  { %v1688_v54 = vpop.xlane.xlu0 %1687 }
 0x77e   :  { %v1537_v5 = vpop.permute.xlu1 %1536  ;;  %v3959_v23 = vpop.eup %3958 }
 0x780   :  { %v1344_v52 = vpop.xlane.xlu0 %1343 }
 0x784   :  { %v1338_v15 = vpop.xlane.xlu0 %1337 }
 0x788   :  { %v1361_v20 = vpop.permute.xlu0 %1360 }
 0x789   :  { %3483 = vmatprep.subr.bf16.mxu1 %v1361_v20 }
 0x78a   :  { %3484 = vmatpush3.bf16.msra.mxu1 %v1361_v20 }
 0x78b   :  { %3485 = vmatprep.subr.bf16.mxu1 %v1359_v2 }
 0x78c   :  { %v4585_v16 = vpop.permute.xlu0 %1767 }
 0x78e   :  { %3486 = vmatpush3.bf16.msra.mxu1 %v1359_v2  ;;  %v1529_v2 = vmul.f32 %v3957_v58, %v4513_v1 }
 0x78f   :  { %3499 = vmatprep.subr.bf16.mxu1 %v1537_v5 }
 0x790   :  { %v1946_v40 = vpop.permute.xlu0 %1945 }
 0x791   :  { %v1957_v7 = vsel %vm898_vm0, %v1946_v40, 0  ;;  %3595 = vmatprep.subr.msk.bf16.mxu0 %vm898_vm0, %v1946_v40 }
 0x792   :  { %3540 = vmatpush3.bf16.xpose.msra.mxu0 %v1957_v7 }
 0x794   :  { %v4589_v43 = vpop.permute.xlu0 %1761 }
 0x798   :  { %v1940_v27 = vpop.permute.xlu0 %1939 }
 0x799   :  { %3543 = vmatprep.mubr.msk.bf16.mxu0 %vm898_vm0, %v1940_v27 }
 0x7af   :  { %v1347_v55 = vpop.xlane.xlu1 %1346 }
 0x7b0   :  { %3960 = vrcp.f32 %v1347_v55 }
 0x7b1   :  { %3962 = vrcp.f32 %v1338_v15  ;;  %v1528_v15 = vmul.f32 %v3959_v23, %v4523_v34  ;;  %v868_v34 = vadd.f32 %v4351_v44, %v4343_v14 }
 0x7b2   :  { %3964 = vrcp.f32 %v1344_v52 }
 0x7b3   :  { %v1341_v59 = vpop.xlane.xlu1 %1340 }
 0x7b4   :  { %3966 = vrcp.f32 %v1341_v59  ;;  %v1779_v59 = vsel %vm898_vm0, %v4585_v16, 0 }
 0x7b5   :  { %3968 = vrcp.f32 %v1520_v19 }
 0x7b6   :  { %3970 = vrcp.f32 %v1682_v8 }
 0x7b7   :  { %v1535_v47 = vpop.permute.xlu1 %1534  ;;  %3972 = vrcp.f32 %v1523_v6 }
 0x7b8   :  { %3974 = vrcp.f32 %v1685_v9 }
 0x7b9   :  { %3976 = vrcp.f32 %v1688_v54 }
 0x7ba   :  { %3978 = vrcp.f32 %v1691_v13 }
 0x7bb   :  { %v1766_v48 = vpop.permute.xlu1 %1765 }
 0x7bd   :  { %v3961_v60 = vpop.eup %3960 }
 0x7be   :  { %v3963_v61 = vpop.eup %3962  ;;  %v1355_v35 = vmul.f32 %v3961_v60, %v3953_v51 }
 0x7bf   :  { %v1760_v4 = vpop.permute.xlu1 %1759  ;;  %v3965_v53 = vpop.eup %3964  ;;  %v1352_v50 = vmul.f32 %v3963_v61, %v4551_v49  ;;  %v1532_v49 = vpack.c.bf16 %v1529_v2, %v1528_v15 }
 0x7c0   :  { %v1354_v6 = vmul.f32 %v3965_v53, %v4547_v32  ;;  %v872_v32 = vadd.f32 %v4459_v3, %v4343_v14 }
 0x7c1   :  { %v3967_v29 = vpop.eup %3966 }
 0x7c2   :  { %v1353_v52 = vmul.f32 %v3967_v29, %v3955_v31  ;;  %v1357_v20 = vpack.c.bf16 %v1355_v35, %v1354_v6  ;;  %v3969_v54 = vpop.eup %3968  ;;  %v4607_v7 = vpack.c.bf16 %v872_v32, %v868_v34 }
 0x7c3   :  { %v1944_v19 = vpop.permute.xlu1 %1943  ;;  %v3971_v51 = vpop.eup %3970  ;;  %v1530_v13 = vmul.f32 %v3969_v54, %v4531_v12 }
 0x7c4   :  { %v1954_v8 = vsel %vm898_vm0, %v1944_v19, 0  ;;  %3596 = vmatprep.subr.msk.bf16.mxu0 %vm898_vm0, %v1944_v19  ;;  %v1356_v9 = vpack.c.bf16 %v1353_v52, %v1352_v50  ;;  %v3973_v31 = vpop.eup %3972  ;;  %v1696_v40 = vmul.f32 %v3971_v51, %v4539_v10 }
 0x7c5   :  { %3542 = vmatpush3.bf16.xpose.msra.mxu0 %v1954_v8  ;;  %v3975_v1 = vpop.eup %3974  ;;  %v1531_v44 = vmul.f32 %v3973_v31, %v4519_v33 }
 0x7c6   :  { %3487 = vmatprep.mubr.msk.bf16.mxu1 %vm898_vm0, %v1356_v9  ;;  %v1697_v14 = vmul.f32 %v3975_v1, %v4527_v21 }
 0x7c7   :  { %3488 = vmatmul.mubr.msk.bf16.vlgmr.msra.gmra.mxu1 %vm898_vm0, %v1357_v20  ;;  %v1942_v27 = vpop.permute.xlu1 %1941  ;;  %v1533_v3 = vpack.c.bf16 %v1531_v44, %v1530_v13 }
 0x7c8   :  { %3500 = vmatpush3.bf16.msra.mxu1 %v1537_v5  ;;  %3503 = vmatprep.mubr.msk.bf16.mxu1 %vm898_vm0, %v1532_v49  ;;  %v3977_v5 = vpop.eup %3976  ;;  %v1700_v55 = vpack.c.bf16 %v1697_v14, %v1696_v40  ;;  %v4666_v49 = vld [vmem:[%s5067_s4 + $0x10] sm:$0xff]  ;;  %v4688_v14 = vld [vmem:[%s5067_s4] sm:$0xff] }
 0x7c9   :  { %3501 = vmatprep.subr.bf16.mxu1 %v1535_v47  ;;  %v3979_v12 = vpop.eup %3978  ;;  %v1698_v33 = vmul.f32 %v3977_v5, %v4543_v45  ;;  %v1776_v45 = vsel %vm898_vm0, %v1766_v48, 0 }
 0x7ca   :  { %v1699_v10 = vmul.f32 %v3979_v12, %v4535_v42 }
 0x7cc   :  { %3502 = vmatpush3.bf16.msra.mxu1 %v1535_v47  ;;  %3544 = vmatmul.mubr.msk.bf16.vlgmr.msra.gmra.mxu0 %vm898_vm0, %v1942_v27  ;;  %v1701_v21 = vpack.c.bf16 %v1699_v10, %v1698_v33 }
 0x7cd   :  { %3515 = vmatprep.subr.bf16.mxu1 %v4607_v7 }
 0x7cf   :  { %3504 = vmatmul.mubr.msk.bf16.vlgmr.msra.gmra.mxu1 %vm898_vm0, %v1533_v3 }
 0x7d0   :  { %3516 = vmatpush3.bf16.msra.mxu1 %v4607_v7  ;;  %3519 = vmatprep.mubr.msk.bf16.mxu1 %vm898_vm0, %v1700_v55 }
 0x7d1   :  { %3517 = vmatprep.subr.bf16.mxu1 %v4349_v41 }
 0x7d4   :  { %3518 = vmatpush3.bf16.msra.mxu1 %v4349_v41 }
 0x7d5   :  { %3593 = vmatprep.subr.msk.bf16.mxu1 %vm898_vm0, %v4585_v16 }
 0x7d7   :  { %3520 = vmatmul.mubr.msk.bf16.vlgmr.msra.gmra.mxu1 %vm898_vm0, %v1701_v21 }
 0x7d8   :  { %3524 = vmatpush3.bf16.xpose.msra.mxu1 %v1779_v59  ;;  %3527 = vmatprep.mubr.msk.bf16.mxu1 %vm898_vm0, %v1760_v4 }
 0x7d9   :  { %3594 = vmatprep.subr.msk.bf16.mxu1 %vm898_vm0, %v1766_v48 }
 0x7e0   :  { %3526 = vmatpush3.bf16.xpose.msra.mxu1 %v1776_v45 }
 0x7e7   :  { %3528 = vmatmul.mubr.msk.bf16.vlgmr.msra.gmra.mxu1 %vm898_vm0, %v4589_v43 }
 0x887   :  { %v4630_v42 = vpop.f32.mrf.mxu1 }
 0x889   :  { %v4632_v47 = vpop.f32.mrf.mxu1 }
 0x88b   :  { %v4634_v58 = vpop.f32.mrf.mxu1 }
 0x88c   :  { %v3657_v16 = vpack.i.bf16 %v4634_v58, %v4630_v42  ;;  %v3545_v52 = vpop.f32.mrf.mxu0 }
 0x88d   :  { %v4638_v23 = vpop.f32.mrf.mxu1  ;;  %v2002_v12 = vadd.f32 %v4666_v49, %v3545_v52 }
 0x88e   :  { %v3627_v60 = vpack.i.bf16 %v4638_v23, %v4632_v47  ;;  %v1993_v19 = vpop.f32.mrf.mxu0 }
 0x88f   :  { %v4642_v61 = vpop.f32.mrf.mxu1  ;;  %v2014_v21 = vsel %vm898_vm0, %v2002_v12, -inf }
 0x890   :  { %v3546_v9 = vpop.f32.mrf.mxu0 }
 0x891   :  { %v4644_v48 = vpop.f32.mrf.mxu1 }
 0x892   :  { %v1996_v32 = vpop.f32.mrf.mxu0 }
 0x893   :  { %v4646_v4 = vpop.f32.mrf.mxu1  ;;  %v1997_v13 = vadd.f32 %v1996_v32, %v4332_v62 }
 0x894   :  { %v3667_v43 = vpack.i.bf16 %v4646_v4, %v4642_v61  ;;  %v3816_v4 = vld [vmem:[%s5070_s7 + $0x70] ss:$8 sps:$4 sm:$0xff]  }
 0x895   :  { %v4650_v53 = vpop.f32.mrf.mxu1  ;;  %v2011_v55 = vsel %vm898_vm0, %v1997_v13, -inf }
 0x896   :  { %v3632_v29 = vpack.i.bf16 %v4650_v53, %v4644_v48  ;;  %v3821_v53 = vld [vmem:[%s5070_s7 + $0x64] ss:$8 sps:$4 sm:$0xff]  }
 0x897   :  { %v4654_v35 = vpop.f32.mrf.mxu1 }
 0x899   :  { %v4656_v50 = vpop.f32.mrf.mxu1 }
 0x89b   :  { %v4658_v15 = vpop.f32.mrf.mxu1 }
 0x89d   :  { %v4660_v6 = vpop.f32.mrf.mxu1 }
 0x8a7   :  { %v3529_v8 = vpop.f32.mrf.mxu1 }
 0x8a8   :  { %v1824_v51 = vadd.f32 %v4666_v49, %v3529_v8 }
 0x8a9   :  { %v1815_v2 = vpop.f32.mrf.mxu1 }
 0x8aa   :  { %v1816_v20 = vadd.f32 %v1815_v2, %v4319_v57  ;;  %v4677_v57 = vld [vmem:[%s5067_s4 + $0x18] sm:$0xff]  ;;  %v1836_v44 = vsel %vm898_vm0, %v1824_v51, -inf }
 0x8ab   :  { %v3530_v54 = vpop.f32.mrf.mxu1  ;;  %v2005_v3 = vadd.f32 %v4677_v57, %v3546_v9 }
 0x8ac   :  { %v1830_v34 = vsel %vm898_vm0, %v1816_v20, -inf  ;;  %v4680_v40 = vadd.f32 %v4677_v57, %v3530_v54 }
 0x8ad   :  { %v1818_v31 = vpop.f32.mrf.mxu1  ;;  %1831 = vmax.xlane.f32.xlu0 %v1830_v34  ;;  %v2017_v33 = vsel %vm898_vm0, %v2005_v3, -inf }
 0x8ae   :  { %v4671_v1 = vadd.f32 %v1818_v31, %v4332_v62  ;;  %v1994_v62 = vadd.f32 %v4688_v14, %v1993_v19  ;;  %v1839_v5 = vsel %vm898_vm0, %v4680_v40, -inf }
 0x8b0   :  { %v1833_v27 = vsel %vm898_vm0, %v4671_v1, -inf  ;;  %v2008_v10 = vsel %vm898_vm0, %v1994_v62, -inf }
 0x8b1   :  { %1834 = vmax.xlane.f32.xlu1 %v1833_v27  ;;  %1837 = vmax.xlane.f32.xlu0 %v1836_v44 }
 0x8b5   :  { %1840 = vmax.xlane.f32.xlu0 %v1839_v5  ;;  %2012 = vmax.xlane.f32.xlu1 %v2011_v55 }
 0x8b9   :  { %2018 = vmax.xlane.f32.xlu1 %v2017_v33  ;;  %2009 = vmax.xlane.f32.xlu0 %v2008_v10 }
 0x8bd   :  { %2015 = vmax.xlane.f32.xlu0 %v2014_v21 }
 0x936   :  { %v1832_v59 = vpop.xlane.xlu0 %1831 }
 0x937   :  { %v1842_v21 = vsub.f32 %v1816_v20, %v1832_v59 }
 0x939   :  { %v1846_v26 = vmul.f32 1.442695, %v1842_v21 }
 0x93a   :  { %v1835_v45 = vpop.xlane.xlu1 %1834  ;;  %v1838_v19 = vpop.xlane.xlu0 %1837 }
 0x93b   :  { %v1844_v5 = vsub.f32 %v1824_v51, %v1838_v19 }
 0x93d   :  { %v1850_v28 = vmul.f32 1.442695, %v1844_v5 }
 0x93e   :  { %v2013_v8 = vpop.xlane.xlu1 %2012  ;;  %v1841_v9 = vpop.xlane.xlu0 %1840 }
 0x93f   :  { %v2021_v2 = vsub.f32 %v1997_v13, %v2013_v8 }
 0x941   :  { %v2026_v54 = vmul.f32 1.442695, %v2021_v2 }
 0x942   :  { %v2019_v34 = vpop.xlane.xlu1 %2018  ;;  %v2010_v32 = vpop.xlane.xlu0 %2009 }
 0x943   :  { %3980 = vpow2.f32 %v2026_v54  ;;  %v2023_v52 = vsub.f32 %v2005_v3, %v2019_v34  ;;  %v2020_v31 = vsub.f32 %v1994_v62, %v2010_v32  ;;  %v1845_v54 = vsub.f32 %v4680_v40, %v1841_v9 }
 0x944   :  { %v1843_v34 = vsub.f32 %v4671_v1, %v1835_v45 }
 0x945   :  { %v2030_v27 = vmul.f32 1.442695, %v2023_v52  ;;  %v2024_v44 = vmul.f32 1.442695, %v2020_v31  ;;  %v1852_v32 = vmul.f32 1.442695, %v1845_v54 }
 0x946   :  { %v2016_v55 = vpop.xlane.xlu0 %2015  ;;  %v1848_v52 = vmul.f32 1.442695, %v1843_v34 }
 0x947   :  { %3982 = vpow2.f32 %v2030_v27  ;;  %v2022_v33 = vsub.f32 %v2002_v12, %v2016_v55 }
 0x948   :  { %3984 = vpow2.f32 %v2024_v44 }
 0x949   :  { %v2028_v10 = vmul.f32 1.442695, %v2022_v33 }
 0x94b   :  { %3986 = vpow2.f32 %v2028_v10 }
 0x94c   :  { %3988 = vpow2.f32 %v1850_v28 }
 0x94d   :  { %3990 = vpow2.f32 %v1846_v26 }
 0x94e   :  { %3992 = vpow2.f32 %v1852_v32 }
 0x94f   :  { %3994 = vpow2.f32 %v1848_v52 }
 0x950   :  { %v4699_v13 = vpop.eup %3980 }
 0x951   :  { %v2035_v8 = vsel %vm898_vm0, %v4699_v13, 0.0 }
 0x952   :  { %2036 = vadd.xlane.f32.xlu1 %v2035_v8 }
 0x954   :  { %v4703_v62 = vpop.eup %3982 }
 0x955   :  { %v4705_v51 = vpop.eup %3984  ;;  %v2041_v3 = vsel %vm898_vm0, %v4703_v62, 0.0 }
 0x956   :  { %2042 = vadd.xlane.f32.xlu1 %v2041_v3  ;;  %v2032_v20 = vsel %vm898_vm0, %v4705_v51, 0.0 }
 0x957   :  { %2033 = vadd.xlane.f32.xlu0 %v2032_v20 }
 0x958   :  { %v4711_v28 = vpop.eup %3986 }
 0x959   :  { %v2038_v12 = vsel %vm898_vm0, %v4711_v28, 0.0  ;;  %v3989_v59 = vpop.eup %3988 }
 0x95a   :  { %v1860_v26 = vsel %vm898_vm0, %v3989_v59, 0.0  ;;  %v3991_v19 = vpop.eup %3990 }
 0x95b   :  { %2039 = vadd.xlane.f32.xlu0 %v2038_v12  ;;  %v1854_v2 = vsel %vm898_vm0, %v3991_v19, 0.0  ;;  %v3993_v31 = vpop.eup %3992 }
 0x95c   :  { %v1863_v27 = vsel %vm898_vm0, %v3993_v31, 0.0  ;;  %v3995_v44 = vpop.eup %3994 }
 0x95d   :  { %v1857_v40 = vsel %vm898_vm0, %v3995_v44, 0.0 }
 0x95f   :  { %1861 = vadd.xlane.f32.xlu0 %v1860_v26 }
 0x963   :  { %1855 = vadd.xlane.f32.xlu0 %v1854_v2 }
 0x967   :  { %1878 = vrot.lane.b32.xlu1 %v4349_v41, %s4123_s25 }
 0x96b   :  { %2056 = vrot.lane.b32.xlu1 %v4607_v7, %s4124_s26 }
 0x979   :  { %1880 = vrot.lane.b32.xlu0 %v4607_v7, %s4123_s25 }
 0x97d   :  { %2121 = vrot.lane.b32.xlu0 %v4429_v56, %s4125_s27 }
 0x981   :  { %2115 = vrot.lane.b32.xlu0 %v4286_v0, %s4125_s27 }
 0x98f   :  { %1864 = vadd.xlane.f32.xlu1 %v1863_v27 }
 0x993   :  { %1858 = vadd.xlane.f32.xlu1 %v1857_v40 }
 0x9a4   :  { %2054 = vrot.lane.b32.xlu1 %v4349_v41, %s4124_s26 }
 0x9a8   :  { %2119 = vrot.lane.b32.xlu1 %v4276_v46, %s4125_s27 }
 0x9ac   :  { %2117 = vrot.lane.b32.xlu1 %v4454_v17, %s4125_s27 }
 0x9db   :  { %v2037_v0 = vpop.xlane.xlu1 %2036 }
 0x9dc   :  { %3996 = vrcp.f32 %v2037_v0 }
 0x9df   :  { %v2043_v9 = vpop.xlane.xlu1 %2042 }
 0x9e0   :  { %v2034_v56 = vpop.xlane.xlu0 %2033 }
 0x9e1   :  { %3998 = vrcp.f32 %v2034_v56 }
 0x9e3   :  { %v1879_v55 = vpop.permute.xlu1 %1878 }
 0x9e4   :  { %v2040_v1 = vpop.xlane.xlu0 %2039 }
 0x9e7   :  { %v2057_v10 = vpop.permute.xlu1 %2056 }
 0x9e8   :  { %v1862_v45 = vpop.xlane.xlu0 %1861 }
 0x9e9   :  { %v3997_v17 = vpop.eup %3996 }
 0x9ea   :  { %v2049_v40 = vmul.f32 %v3997_v17, %v4699_v13 }
 0x9ec   :  { %v1856_v5 = vpop.xlane.xlu0 %1855 }
 0x9ee   :  { %v3999_v8 = vpop.eup %3998 }
 0x9ef   :  { %v2048_v32 = vmul.f32 %v3999_v8, %v4705_v51 }
 0x9f0   :  { %v1881_v33 = vpop.permute.xlu0 %1880 }
 0x9f1   :  { %3531 = vmatprep.subr.bf16.mxu1 %v1881_v33 }
 0x9f2   :  { %3532 = vmatpush3.bf16.msra.mxu1 %v1881_v33 }
 0x9f3   :  { %3533 = vmatprep.subr.bf16.mxu1 %v1879_v55 }
 0x9f6   :  { %3534 = vmatpush3.bf16.msra.mxu1 %v1879_v55 }
 0x9f7   :  { %3547 = vmatprep.subr.bf16.mxu1 %v2057_v10 }
 0xa18   :  { %v1865_v21 = vpop.xlane.xlu1 %1864 }
 0xa19   :  { %4000 = vrcp.f32 %v1865_v21 }
 0xa1a   :  { %4002 = vrcp.f32 %v1856_v5 }
 0xa1b   :  { %4004 = vrcp.f32 %v1862_v45 }
 0xa1c   :  { %v1859_v46 = vpop.xlane.xlu1 %1858 }
 0xa1d   :  { %4006 = vrcp.f32 %v1859_v46 }
 0xa1e   :  { %4008 = vrcp.f32 %v2040_v1  ;;  %v2052_v1 = vpack.c.bf16 %v2049_v40, %v2048_v32 }
 0xa1f   :  { %4010 = vrcp.f32 %v2043_v9 }
 0xa20   :  { %v2055_v9 = vpop.permute.xlu1 %2054 }
 0xa24   :  { %v2120_v5 = vpop.permute.xlu1 %2119 }
 0xa25   :  { %v2130_v55 = vsel %vm898_vm0, %v2120_v5, 0 }
 0xa26   :  { %v4001_v3 = vpop.eup %4000 }
 0xa27   :  { %v4003_v20 = vpop.eup %4002  ;;  %v1873_v2 = vmul.f32 %v4001_v3, %v3993_v31 }
 0xa28   :  { %v4005_v12 = vpop.eup %4004  ;;  %v1870_v54 = vmul.f32 %v4003_v20, %v3991_v19  ;;  %v2122_v19 = vpop.permute.xlu0 %2121 }
 0xa29   :  { %v1872_v52 = vmul.f32 %v4005_v12, %v3989_v59  ;;  %v2133_v31 = vsel %vm898_vm0, %v2122_v19, 0 }
 0xa2a   :  { %v4007_v26 = vpop.eup %4006 }
 0xa2b   :  { %v1871_v34 = vmul.f32 %v4007_v26, %v3995_v44  ;;  %v1875_v56 = vpack.c.bf16 %v1873_v2, %v1872_v52  ;;  %v4009_v0 = vpop.eup %4008 }
 0xa2c   :  { %v4011_v45 = vpop.eup %4010  ;;  %v2050_v51 = vmul.f32 %v4009_v0, %v4711_v28  ;;  %v2116_v44 = vpop.permute.xlu0 %2115  ;;  %v4031_v0 = vld [vmem:[%s5067_s4 + $0x8] sm:$0xff] }
 0xa2d   :  { %v1874_v27 = vpack.c.bf16 %v1871_v34, %v1870_v54  ;;  %v2051_v59 = vmul.f32 %v4011_v45, %v4703_v62  ;;  %v2118_v28 = vpop.permute.xlu1 %2117 }
 0xa2f   :  { %3535 = vmatprep.mubr.msk.bf16.mxu1 %vm898_vm0, %v1874_v27  ;;  %v2053_v13 = vpack.c.bf16 %v2051_v59, %v2050_v51 }
 0xa30   :  { %3536 = vmatmul.mubr.msk.bf16.vlgmr.msra.gmra.mxu1 %vm898_vm0, %v1875_v56 }
 0xa31   :  { %3548 = vmatpush3.bf16.msra.mxu1 %v2057_v10  ;;  %3551 = vmatprep.mubr.msk.bf16.mxu1 %vm898_vm0, %v2052_v1 }
 0xa32   :  { %3549 = vmatprep.subr.bf16.mxu1 %v2055_v9 }
 0xa35   :  { %3550 = vmatpush3.bf16.msra.mxu1 %v2055_v9 }
 0xa36   :  { %3597 = vmatprep.subr.msk.bf16.mxu1 %vm898_vm0, %v2122_v19 }
 0xa38   :  { %3552 = vmatmul.mubr.msk.bf16.vlgmr.msra.gmra.mxu1 %vm898_vm0, %v2053_v13 }
 0xa39   :  { %3556 = vmatpush3.bf16.xpose.msra.mxu1 %v2133_v31  ;;  %3559 = vmatprep.mubr.msk.bf16.mxu1 %vm898_vm0, %v2116_v44 }
 0xa3a   :  { %3598 = vmatprep.subr.msk.bf16.mxu1 %vm898_vm0, %v2120_v5 }
 0xa41   :  { %3558 = vmatpush3.bf16.xpose.msra.mxu1 %v2130_v55 }
 0xa48   :  { %3560 = vmatmul.mubr.msk.bf16.vlgmr.msra.gmra.mxu1 %vm898_vm0, %v2118_v28 }
 0xaf0   :  { %v3537_v62 = vpop.f32.mrf.mxu1 }
 0xaf2   :  { %v1924_v33 = vpop.f32.mrf.mxu1 }
 0xaf4   :  { %v3538_v10 = vpop.f32.mrf.mxu1 }
 0xaf5   :  { %v3637_v21 = vpack.i.bf16 %v3538_v10, %v3537_v62 }
 0xaf6   :  { %v1927_v46 = vpop.f32.mrf.mxu1 }
 0xaf7   :  { %v3612_v17 = vpack.i.bf16 %v1927_v46, %v1924_v33 }
 0xaf8   :  { %v4751_v8 = vpop.f32.mrf.mxu1 }
 0xafa   :  { %v2100_v3 = vpop.f32.mrf.mxu1 }
 0xafc   :  { %v4753_v20 = vpop.f32.mrf.mxu1 }
 0xafd   :  { %v3652_v12 = vpack.i.bf16 %v4753_v20, %v4751_v8  ;;  %v3870_v8 = vld [vmem:[%s5072_s9 + $0xe0] sm:$0xff]  }
 0xafe   :  { %v2103_v26 = vpop.f32.mrf.mxu1 }
 0xaff   :  { %v3622_v2 = vpack.i.bf16 %v2103_v26, %v2100_v3 }
 0xb08   :  { %v3561_v54 = vpop.f32.mrf.mxu1 }
 0xb09   :  { %v2178_v27 = vadd.f32 %v4666_v49, %v3561_v54 }
 0xb0a   :  { %v2169_v34 = vpop.f32.mrf.mxu1 }
 0xb0b   :  { %v2170_v32 = vadd.f32 %v4688_v14, %v2169_v34  ;;  %v2190_v19 = vsel %vm898_vm0, %v2178_v27, -inf }
 0xb0c   :  { %v3562_v52 = vpop.f32.mrf.mxu1 }
 0xb0d   :  { %v2184_v40 = vsel %vm898_vm0, %v2170_v32, -inf  ;;  %v2181_v45 = vadd.f32 %v4677_v57, %v3562_v52 }
 0xb0e   :  { %v2172_v56 = vpop.f32.mrf.mxu1  ;;  %2185 = vmax.xlane.f32.xlu0 %v2184_v40  ;;  %v3830_v40 = vld [vmem:[%s5070_s7 + $0x34] ss:$8 sps:$4 sm:$0xff]  }
 0xb0f   :  { %v2173_v1 = vadd.f32 %v4031_v0, %v2172_v56  ;;  %v2193_v14 = vsel %vm898_vm0, %v2181_v45, -inf  ;;  %v3828_v56 = vld [vmem:[%s5070_s7 + $0x30] ss:$8 sps:$4 sm:$0xff]   ;;  %v3833_v0 = vld [vmem:[%s5070_s7 + $0x24] ss:$8 sps:$4 sm:$0xff]  }
 0xb11   :  { %v2187_v9 = vsel %vm898_vm0, %v2173_v1, -inf }
 0xb12   :  { %2188 = vmax.xlane.f32.xlu1 %v2187_v9  ;;  %2191 = vmax.xlane.f32.xlu0 %v2190_v19  ;;  %v3834_v9 = vld [vmem:[%s5070_s7 + $0x10] ss:$8 sps:$4 sm:$0xff]   ;;  %v3839_v19 = vld [vmem:[%s5070_s7 + $0x4] ss:$8 sps:$4 sm:$0xff]  }
 0xb16   :  { %2194 = vmax.xlane.f32.xlu0 %v2193_v14  ;;  %v3837_v14 = vld [vmem:[%s5070_s7] ss:$8 sps:$4 sm:$0xff]  }
 0xb97   :  { %v2186_v49 = vpop.xlane.xlu0 %2185 }
 0xb98   :  { %v2196_v51 = vsub.f32 %v2170_v32, %v2186_v49  ;;  %v3842_v49 = vld [vmem:[%s5070_s7 + $0xf4] ss:$8 sps:$4 sm:$0xff]  }
 0xb9a   :  { %v2200_v55 = vmul.f32 1.442695, %v2196_v51  ;;  %v3840_v51 = vld [vmem:[%s5070_s7 + $0xf0] ss:$8 sps:$4 sm:$0xff]  }
 0xb9b   :  { %v2189_v59 = vpop.xlane.xlu1 %2188  ;;  %v2192_v13 = vpop.xlane.xlu0 %2191 }
 0xb9c   :  { %v2198_v31 = vsub.f32 %v2178_v27, %v2192_v13  ;;  %v2197_v44 = vsub.f32 %v2173_v1, %v2189_v59  ;;  %v3825_v27 = vld [vmem:[%s5070_s7 + $0x40] ss:$8 sps:$4 sm:$0xff]   ;;  %v3845_v59 = vld [vmem:[%s5070_s7 + $0xe4] ss:$8 sps:$4 sm:$0xff]  }
 0xb9d   :  { %v3831_v1 = vld [vmem:[%s5070_s7 + $0x20] ss:$8 sps:$4 sm:$0xff]  }
 0xb9e   :  { %v2204_v5 = vmul.f32 1.442695, %v2198_v31  ;;  %v2202_v57 = vmul.f32 1.442695, %v2197_v44  ;;  %v3843_v13 = vld [vmem:[%s5070_s7 + $0xe0] ss:$8 sps:$4 sm:$0xff]  }
 0xb9f   :  { %v2195_v28 = vpop.xlane.xlu0 %2194  ;;  %v3848_v31 = vld [vmem:[%s5070_s7 + $0xd4] ss:$8 sps:$4 sm:$0xff]   ;;  %v3846_v44 = vld [vmem:[%s5070_s7 + $0xd0] ss:$8 sps:$4 sm:$0xff]  }
 0xba0   :  { %v2199_v62 = vsub.f32 %v2181_v45, %v2195_v28  ;;  %4012 = vpow2.f32 %v2204_v5  ;;  %v3836_v45 = vld [vmem:[%s5070_s7 + $0x14] ss:$8 sps:$4 sm:$0xff]   ;;  %v3851_v5 = vld [vmem:[%s5070_s7 + $0xc4] ss:$8 sps:$4 sm:$0xff]  }
 0xba1   :  { %4014 = vpow2.f32 %v2200_v55  ;;  %v3849_v55 = vld [vmem:[%s5070_s7 + $0xc0] ss:$8 sps:$4 sm:$0xff]   ;;  %v3854_v28 = vld [vmem:[%s5070_s7 + $0xb4] ss:$8 sps:$4 sm:$0xff]  }
 0xba2   :  { %v2206_v33 = vmul.f32 1.442695, %v2199_v62  ;;  %v3852_v62 = vld [vmem:[%s5070_s7 + $0xb0] ss:$8 sps:$4 sm:$0xff]  }
 0xba4   :  { %4016 = vpow2.f32 %v2206_v33  ;;  %v3855_v33 = vld [vmem:[%s5070_s7 + $0xa0] ss:$8 sps:$4 sm:$0xff]  }
 0xba5   :  { %4018 = vpow2.f32 %v2202_v57  ;;  %v3857_v57 = vld [vmem:[%s5070_s7 + $0xa4] ss:$8 sps:$4 sm:$0xff]  }
 0xbad   :  { %v4013_v10 = vpop.eup %4012 }
 0xbae   :  { %v2214_v46 = vsel %vm898_vm0, %v4013_v10, 0.0  ;;  %v4015_v3 = vpop.eup %4014 }
 0xbaf   :  { %2215 = vadd.xlane.f32.xlu0 %v2214_v46  ;;  %v2208_v32 = vsel %vm898_vm0, %v4015_v3, 0.0  ;;  %v3858_v46 = vld [vmem:[%s5070_s7 + $0x90] ss:$8 sps:$4 sm:$0xff]  }
 0xbb1   :  { %v4017_v26 = vpop.eup %4016 }
 0xbb2   :  { %v2217_v54 = vsel %vm898_vm0, %v4017_v26, 0.0  ;;  %v4019_v34 = vpop.eup %4018 }
 0xbb3   :  { %2218 = vadd.xlane.f32.xlu1 %v2217_v54  ;;  %2209 = vadd.xlane.f32.xlu0 %v2208_v32  ;;  %v2211_v52 = vsel %vm898_vm0, %v4019_v34, 0.0 }
 0xbb7   :  { %2212 = vadd.xlane.f32.xlu1 %v2211_v52 }
 0xbc8   :  { %2230 = vrot.lane.b32.xlu1 %v4349_v41, %s4125_s27 }
 0xbc9   :  { %2232 = vrot.lane.b32.xlu0 %v4607_v7, %s4125_s27 }
 0xbcc   :  { %3613 = vrot.lane.b32.xlu1 %v3612_v17, %s4125_s27  ;;  %v3822_v17 = vld [vmem:[%s5070_s7 + $0x50] ss:$8 sps:$4 sm:$0xff]  }
 0xbcd   :  { %3623 = vrot.lane.b32.xlu0 %v3622_v2, %s4124_s26  ;;  %v3827_v2 = vld [vmem:[%s5070_s7 + $0x44] ss:$8 sps:$4 sm:$0xff]  }
 0xbd0   :  { %3618 = vrot.lane.b32.xlu1 %v3617_v30, %s4125_s27 }
 0xbd1   :  { %3638 = vrot.lane.b32.xlu0 %v3637_v21, %s4125_s27  ;;  %v3824_v21 = vld [vmem:[%s5070_s7 + $0x54] ss:$8 sps:$4 sm:$0xff]  }
 0xbd4   :  { %3628 = vrot.lane.b32.xlu1 %v3627_v60, %s4124_s26 }
 0xbd8   :  { %3633 = vrot.lane.b32.xlu1 %v3632_v29, %s4123_s25  ;;  %v3819_v29 = vld [vmem:[%s5070_s7 + $0x60] ss:$8 sps:$4 sm:$0xff]  }
 0xbdc   :  { %3643 = vrot.lane.b32.xlu1 %v3642_v24, %s4125_s27 }
 0xbe0   :  { %3658 = vrot.lane.b32.xlu1 %v3657_v16, %s4124_s26 }
 0xbe4   :  { %3668 = vrot.lane.b32.xlu1 %v3667_v43, %s4123_s25  ;;  %v3818_v43 = vld [vmem:[%s5070_s7 + $0x74] ss:$8 sps:$4 sm:$0xff]  }
 0xc38   :  { %v2216_v41 = vpop.xlane.xlu0 %2215 }
 0xc3c   :  { %v2219_v11 = vpop.xlane.xlu1 %2218  ;;  %v2210_v63 = vpop.xlane.xlu0 %2209 }
 0xc3d   :  { %4020 = vrcp.f32 %v2219_v11  ;;  %v3864_v11 = vld [vmem:[%s5072_s9 + $0xf8] sm:$0xff]  }
 0xc3e   :  { %4022 = vrcp.f32 %v2210_v63  ;;  %v3865_v63 = vld [vmem:[%s5072_s9 + $0xb8] sm:$0xff]   ;;  %3394 = vmatprep.subr.bf16.mxu1 %v3864_v11 }
 0xc3f   :  { %4024 = vrcp.f32 %v2216_v41  ;;  %3395 = vmatpush3.bf16.msra.mxu1 %v3865_v63 }
 0xc40   :  { %v2213_v30 = vpop.xlane.xlu1 %2212  ;;  %v2233_v18 = vpop.permute.xlu0 %2232 }
 0xc41   :  { %4026 = vrcp.f32 %v2213_v30  ;;  %3563 = vmatprep.subr.bf16.mxu0 %v2233_v18  ;;  %v3866_v30 = vld [vmem:[%s5072_s9 + $0xf0] sm:$0xff]  }
 0xc42   :  { %3564 = vmatpush3.bf16.msra.mxu0 %v2233_v18  ;;  %v3867_v18 = vld [vmem:[%s5072_s9 + $0xb0] sm:$0xff]   ;;  %3396 = vmatprep.subr.bf16.mxu1 %v3866_v30 }
 0xc43   :  { %3397 = vmatpush3.bf16.msra.mxu1 %v3867_v18 }
 0xc44   :  { %v2231_v22 = vpop.permute.xlu1 %2230 }
 0xc45   :  { %3565 = vmatprep.subr.bf16.mxu0 %v2231_v22 }
 0xc46   :  { %3566 = vmatpush3.bf16.msra.mxu0 %v2231_v22  ;;  %v3868_v22 = vld [vmem:[%s5072_s9 + $0xe8] sm:$0xff]  }
 0xc47   :  { %2621 = vmatprep.subr.bf16.mxu0 %v3818_v43  ;;  %3398 = vmatprep.subr.bf16.mxu1 %v3868_v22 }
 0xc48   :  { %v3614_v20 = vpop.permute.xlu1 %3613 }
 0xc4a   :  { %v4021_v24 = vpop.eup %4020 }
 0xc4b   :  { %v4023_v7 = vpop.eup %4022  ;;  %v2227_v58 = vmul.f32 %v4021_v24, %v4017_v26  ;;  %v3863_v26 = vld [vmem:[%s5070_s7 + $0x84] ss:$8 sps:$4 sm:$0xff]  }
 0xc4c   :  { %v4025_v42 = vpop.eup %4024  ;;  %v2224_v16 = vmul.f32 %v4023_v7, %v4015_v3  ;;  %v3861_v3 = vld [vmem:[%s5070_s7 + $0x80] ss:$8 sps:$4 sm:$0xff]  }
 0xc4d   :  { %v2226_v60 = vmul.f32 %v4025_v42, %v4013_v10  ;;  %v3860_v10 = vld [vmem:[%s5070_s7 + $0x94] ss:$8 sps:$4 sm:$0xff]   ;;  %v3869_v7 = vld [vmem:[%s5072_s9 + $0xa8] sm:$0xff]  }
 0xc4e   :  { %v4027_v47 = vpop.eup %4026  ;;  %3399 = vmatpush3.bf16.msra.mxu1 %v3869_v7 }
 0xc4f   :  { %v2225_v23 = vmul.f32 %v4027_v47, %v4019_v34  ;;  %v2229_v48 = vpack.c.bf16 %v2227_v58, %v2226_v60  ;;  %3400 = vmatprep.subr.bf16.mxu1 %v3870_v8  ;;  %v3624_v58 = vpop.permute.xlu0 %3623  ;;  %v3615_v60 = vunpack.i.l.bf16 %v3614_v20 }
 0xc51   :  { %v2228_v61 = vpack.c.bf16 %v2225_v23, %v2224_v16  ;;  %v3616_v23 = vunpack.i.h.bf16 %v3614_v20 }
 0xc53   :  { %3567 = vmatprep.mubr.msk.bf16.mxu0 %vm898_vm0, %v2228_v61  ;;  %v3639_v61 = vpop.permute.xlu0 %3638 }
 0xc54   :  { %3568 = vmatmul.mubr.msk.bf16.vlgmr.msra.gmra.mxu0 %vm898_vm0, %v2229_v48 }
 0xc55   :  { %2622 = vmatpush1.bf16.msra.mxu0 %v3816_v4 }
 0xc56   :  { %2623 = vmatprep.subr.bf16.mxu0 %v3821_v53 }
 0xc59   :  { %2624 = vmatpush1.bf16.msra.mxu0 %v3819_v29 }
 0xc5a   :  { %2625 = vmatprep.subr.bf16.mxu0 %v3824_v21 }
 0xc5d   :  { %2626 = vmatpush1.bf16.msra.mxu0 %v3822_v17 }
 0xc5e   :  { %2627 = vmatprep.subr.bf16.mxu0 %v3827_v2  ;;  %v2402_v2 = vsel %vm898_vm0, %v4660_v6, %v3616_v23  ;;  %v3876_v23 = vld [vmem:[%s5072_s9 + $0xc8] sm:$0xff]  }
 0xc61   :  { %2628 = vmatpush1.bf16.msra.mxu0 %v3825_v27  ;;  %v2401_v27 = vsel %vm898_vm0, %v4656_v50, %v3615_v60  ;;  %v3877_v60 = vld [vmem:[%s5072_s9 + $0x88] sm:$0xff]  }
 0xc62   :  { %2629 = vmatprep.subr.bf16.mxu0 %v3830_v40  ;;  %v3626_v40 = vunpack.i.h.bf16 %v3624_v58 }
 0xc65   :  { %2630 = vmatpush1.bf16.msra.mxu0 %v3828_v56  ;;  %v3625_v56 = vunpack.i.l.bf16 %v3624_v58  ;;  %v3874_v58 = vld [vmem:[%s5072_s9 + $0xd0] sm:$0xff]  }
 0xc66   :  { %2631 = vmatprep.subr.bf16.mxu0 %v3833_v0 }
 0xc69   :  { %2632 = vmatpush1.bf16.msra.mxu0 %v3831_v1 }
 0xc6a   :  { %2633 = vmatprep.subr.bf16.mxu0 %v3836_v45 }
 0xc6d   :  { %2634 = vmatpush1.bf16.msra.mxu0 %v3834_v9 }
 0xc6e   :  { %2635 = vmatprep.subr.bf16.mxu0 %v3839_v19 }
 0xc71   :  { %2636 = vmatpush1.bf16.msra.mxu0 %v3837_v14 }
 0xc72   :  { %2637 = vmatprep.subr.bf16.mxu0 %v3842_v49 }
 0xc75   :  { %2638 = vmatpush2.bf16.msra.mxu0 %v3840_v51  ;;  %v2405_v51 = vsel %vm2391_vm1, %v2401_v27, %v3625_v56 }
 0xc76   :  { %2639 = vmatprep.subr.bf16.mxu0 %v3845_v59  ;;  %v2406_v59 = vsel %vm2391_vm1, %v2402_v2, %v3626_v40  ;;  %v2449_v2 = vld [vmem:[%s5071_s8] sm:$0x3]  ;;  %v5079_v40 = vsub.s32 0, %v4251_v25 }
 0xc78   :  { %v2454_v56 = vrot.slane %v2449_v2, %v5079_v40 }
 0xc79   :  { %2640 = vmatpush2.bf16.msra.mxu0 %v3843_v13  ;;  %v3641_v13 = vunpack.i.h.bf16 %v3639_v61 }
 0xc7a   :  { %2641 = vmatprep.subr.bf16.mxu0 %v3848_v31 }
 0xc7d   :  { %2642 = vmatpush2.bf16.msra.mxu0 %v3846_v44  ;;  %v3640_v44 = vunpack.i.l.bf16 %v3639_v61  ;;  %v3878_v61 = vld [vmem:[%s5072_s9 + $0xc0] sm:$0xff]  }
 0xc7e   :  { %2643 = vmatprep.subr.bf16.mxu0 %v3851_v5 }
 0xc81   :  { %2644 = vmatpush2.bf16.msra.mxu0 %v3849_v55 }
 0xc82   :  { %2645 = vmatprep.subr.bf16.mxu0 %v3854_v28 }
 0xc85   :  { %2646 = vmatpush2.bf16.msra.mxu0 %v3852_v62 }
 0xc86   :  { %2647 = vmatprep.subr.bf16.mxu0 %v3857_v57 }
 0xc89   :  { %2648 = vmatpush2.bf16.msra.mxu0 %v3855_v33 }
 0xc8a   :  { %2649 = vmatprep.subr.bf16.mxu0 %v3860_v10 }
 0xc8d   :  { %2650 = vmatpush2.bf16.msra.mxu0 %v3858_v46 }
 0xc8e   :  { %2651 = vmatprep.subr.bf16.mxu0 %v3863_v26 }
 0xc91   :  { %2652 = vmatpush2.bf16.msra.mxu0 %v3861_v3 }
 0xd14   :  { %v3569_v54 = vpop.f32.mrf.mxu0 }
 0xd16   :  { %v2276_v34 = vpop.f32.mrf.mxu0 }
 0xd18   :  { %v3570_v32 = vpop.f32.mrf.mxu0 }
 0xd19   :  { %v3662_v24 = vpack.i.bf16 %v3570_v32, %v3569_v54  ;;  %v2403_v32 = vsel %vm898_vm0, %v4654_v35, %v3640_v44  ;;  %v3884_v44 = vld [vmem:[%s5072_s9 + $0x68] sm:$0xff]  }
 0xd1a   :  { %v2279_v52 = vpop.f32.mrf.mxu0 }
 0xd1b   :  { %v3647_v41 = vpack.i.bf16 %v2279_v52, %v2276_v34  ;;  %v2404_v34 = vsel %vm898_vm0, %v4658_v15, %v3641_v13  ;;  %v3881_v13 = vld [vmem:[%s5072_s9 + $0x38] sm:$0xff]  }
 0xd1d   :  { %3648 = vrot.lane.b32.xlu0 %v3647_v41, %s4123_s25 }
 0xd21   :  { %3653 = vrot.lane.b32.xlu0 %v3652_v12, %s4124_s26  ;;  %v3619_v12 = vpop.permute.xlu1 %3618 }
 0xd22   :  { %v3621_v48 = vunpack.i.h.bf16 %v3619_v12  ;;  %v3620_v4 = vunpack.i.l.bf16 %v3619_v12  ;;  %v3871_v12 = vld [vmem:[%s5072_s9 + $0xa0] sm:$0xff]  }
 0xd23   :  { %3401 = vmatpush3.bf16.msra.mxu1 %v3871_v12 }
 0xd24   :  { %v2388_v0 = vsel %vm898_vm0, %v4387_v39, %v3621_v48  ;;  %v2387_v1 = vsel %vm898_vm0, %v4383_v37, %v3620_v4  ;;  %v3879_v48 = vld [vmem:[%s5072_s9 + $0x80] sm:$0xff]   ;;  %v3880_v4 = vld [vmem:[%s5072_s9 + $0x78] sm:$0xff]  }
 0xd25   :  { %3663 = vrot.lane.b32.xlu0 %v3662_v24, %s4123_s25  ;;  %v3629_v42 = vpop.permute.xlu1 %3628 }
 0xd26   :  { %v3631_v43 = vunpack.i.h.bf16 %v3629_v42  ;;  %v3630_v53 = vunpack.i.l.bf16 %v3629_v42  ;;  %v3872_v42 = vld [vmem:[%s5072_s9 + $0xd8] sm:$0xff]  }
 0xd27   :  { %3402 = vmatprep.subr.bf16.mxu1 %v3872_v42  ;;  %v3323_v42 = vld [vmem:[%s5073_s10] ss:$0 sm:$0xff]  ;;  %s4092_s10 = scalar_lea.vmem %s3119_s0, 256 }
 0xd28   :  { %v2392_v9 = vsel %vm2391_vm1, %v2387_v1, %v3630_v53  ;;  %v2393_v19 = vsel %vm2391_vm1, %v2388_v0, %v3631_v43  ;;  %v5080_v1 = vsub.s32 1, %v4251_v25  ;;  %v3883_v25 = vld [vmem:[%s5072_s9 + $0x30] sm:$0xff]   ;;  %p4093_p1 = scmp.ne.s32.totalorder %s3119_s0, %s4092_s10  ;;  %p4098_p3 = scmp.lt.s32.totalorder %s4092_s10, %s4092_s10 }
 0xd29   :  { %v3634_v47 = vpop.permute.xlu1 %3633 }
 0xd2a   :  { %v3636_v21 = vunpack.i.h.bf16 %v3634_v47  ;;  %v3635_v17 = vunpack.i.l.bf16 %v3634_v47  ;;  %v3873_v47 = vld [vmem:[%s5072_s9 + $0x98] sm:$0xff]   ;;  %p4099_p4 = por %p4098_p3, %p4097_p2 }
 0xd2b   :  { %3403 = vmatpush3.bf16.msra.mxu1 %v3873_v47 }
 0xd2c   :  { %v2397_v49 = vsel %vm2396_vm2, %v2392_v9, %v3635_v17  ;;  %v2398_v50 = vsel %vm2396_vm2, %v2393_v19, %v3636_v21  ;;  %3404 = vmatprep.subr.bf16.mxu1 %v3874_v58  ;;  %p4100_p5 = pnand %p4099_p4, %p4093_p1 }
 0xd2d   :  { %v3644_v16 = vpop.permute.xlu1 %3643  ;;  %v2413_v57 = vpack.c.bf16 %v2398_v50, %v2397_v49 }
 0xd2e   :  { %v3646_v5 = vunpack.i.h.bf16 %v3644_v16  ;;  %v3645_v55 = vunpack.i.l.bf16 %v3644_v16  ;;  %v3875_v16 = vld [vmem:[%s5072_s9 + $0x90] sm:$0xff]  }
 0xd2f   :  { %3405 = vmatpush3.bf16.msra.mxu1 %v3875_v16 }
 0xd30   :  { %v2390_v52 = vsel %vm898_vm0, %v4385_v38, %v3646_v5  ;;  %v2389_v41 = vsel %vm898_vm0, %v4381_v36, %v3645_v55  ;;  %3406 = vmatprep.subr.bf16.mxu1 %v3876_v23  ;;  %v3885_v5 = vld [vmem:[%s5072_s9 + $0x28] sm:$0xff]   ;;  %v3886_v55 = vld [vmem:[%s5072_s9 + $0x60] sm:$0xff]  }
 0xd31   :  { %v3659_v29 = vpop.permute.xlu1 %3658 }
 0xd32   :  { %v3661_v33 = vunpack.i.h.bf16 %v3659_v29  ;;  %v3660_v10 = vunpack.i.l.bf16 %v3659_v29 }
 0xd33   :  { %3407 = vmatpush3.bf16.msra.mxu1 %v3877_v60 }
 0xd34   :  { %v2394_v63 = vsel %vm2391_vm1, %v2389_v41, %v3660_v10  ;;  %v2395_v30 = vsel %vm2391_vm1, %v2390_v52, %v3661_v33  ;;  %3408 = vmatprep.subr.bf16.mxu1 %v3878_v61  ;;  %v3890_v33 = vld [vmem:[%s5072_s9 + $0x50] sm:$0xff]   ;;  %v3896_v41 = vld [vmem:[%s5074_s11 + $0x18] sm:$0xff]  }
 0xd35   :  { %v3669_v39 = vpop.permute.xlu1 %3668  ;;  %v3891_v10 = vld [vmem:[%s5072_s9 + $0x10] sm:$0xff]  }
 0xd36   :  { %v3671_v46 = vunpack.i.h.bf16 %v3669_v39  ;;  %v3670_v3 = vunpack.i.l.bf16 %v3669_v39 }
 0xd37   :  { %3409 = vmatpush3.bf16.msra.mxu1 %v3879_v48 }
 0xd38   :  { %v2399_v7 = vsel %vm2396_vm2, %v2394_v63, %v3670_v3  ;;  %v2400_v35 = vsel %vm2396_vm2, %v2395_v30, %v3671_v46  ;;  %3416 = vmatprep.subr.bf16.mxu1 %v3880_v4  ;;  %v3892_v46 = vld [vmem:[%s5072_s9 + $0x48] sm:$0xff]   ;;  %v3897_v63 = vld [vmem:[%s5074_s11 + $0x10] sm:$0xff]  }
 0xd39   :  { %v2415_v20 = vpack.c.bf16 %v2400_v35, %v2399_v7  ;;  %v3893_v3 = vld [vmem:[%s5072_s9 + $0x8] sm:$0xff]  }
 0xd3a   :  { %v3898_v30 = vld [vmem:[%s5074_s11 + $0x8] sm:$0xff]  }
 0xd8f   :  { %v3649_v45 = vpop.permute.xlu0 %3648 }
 0xd90   :  { %v3651_v14 = vunpack.i.h.bf16 %v3649_v45  ;;  %v3650_v6 = vunpack.i.l.bf16 %v3649_v45  ;;  %v2458_v45 = vrot.slane %v2449_v2, %v5080_v1 }
 0xd92   :  { %v2409_v31 = vsel %vm2396_vm2, %v2405_v51, %v3650_v6  ;;  %v2410_v37 = vsel %vm2396_vm2, %v2406_v59, %v3651_v14 }
 0xd93   :  { %v3654_v28 = vpop.permute.xlu0 %3653  ;;  %v2414_v62 = vpack.c.bf16 %v2410_v37, %v2409_v31  ;;  %v3882_v31 = vld [vmem:[%s5072_s9 + $0x70] sm:$0xff]  }
 0xd94   :  { %v3656_v26 = vunpack.i.h.bf16 %v3654_v28  ;;  %v3655_v54 = vunpack.i.l.bf16 %v3654_v28  ;;  %v3887_v28 = vld [vmem:[%s5072_s9 + $0x20] sm:$0xff]  }
 0xd95   :  { %2653 = vmatprep.mubr.bf16.mxu0 %v2414_v62  ;;  %v3888_v62 = vld [vmem:[%s5072_s9 + $0x58] sm:$0xff]  }
 0xd96   :  { %2654 = vmatmul.mubr.bf16.vlgmr.msra.gmra.mxu0 %v2413_v57  ;;  %v2407_v24 = vsel %vm2391_vm1, %v2403_v32, %v3655_v54  ;;  %v2408_v15 = vsel %vm2391_vm1, %v2404_v34, %v3656_v26  ;;  %v3889_v57 = vld [vmem:[%s5072_s9 + $0x18] sm:$0xff]   ;;  %v3894_v26 = vld [vmem:[%s5072_s9 + $0x40] sm:$0xff]  }
 0xd97   :  { %v3664_v11 = vpop.permute.xlu0 %3663  ;;  %v3895_v54 = vld [vmem:[%s5072_s9] sm:$0xff]  }
 0xd98   :  { %v3666_v18 = vunpack.i.h.bf16 %v3664_v11  ;;  %v3665_v22 = vunpack.i.l.bf16 %v3664_v11  ;;  %v4126_v11 = vmov 0.0  }
 0xd99   :  { %3571 = vmatprep.subr.bf16.mxu0 %v4126_v11 }
 0xd9a   :  { %v2411_v38 = vsel %vm2396_vm2, %v2407_v24, %v3665_v22  ;;  %v2412_v8 = vsel %vm2396_vm2, %v2408_v15, %v3666_v18  ;;  %3572 = vmatpush3.bf16.msra.mxu0 %v3896_v41  ;;  %v3899_v18 = vld [vmem:[%s5074_s11] sm:$0xff]  }
 0xd9b   :  { %v2416_v36 = vpack.c.bf16 %v2412_v8, %v2411_v38  ;;  %3573 = vmatprep.subr.bf16.mxu0 %v4126_v11 }
 0xd9d   :  { %2663 = vmatprep.mubr.bf16.mxu0 %v2416_v36 }
 0xd9e   :  { %2664 = vmatmul.mubr.bf16.gmra.mxu0 %v2415_v20 }
 0xd9f   :  { %3574 = vmatpush3.bf16.msra.mxu0 %v3897_v63  ;;  %3579 = vmatprep.mubr.msk.bf16.mxu0 %vm4127_vm3, %v4126_v11 }
 0xda0   :  { %3575 = vmatprep.subr.bf16.mxu0 %v4126_v11 }
 0xda3   :  { %3576 = vmatpush3.bf16.msra.mxu0 %v3898_v30 }
 0xda4   :  { %3577 = vmatprep.subr.bf16.mxu0 %v4126_v11 }
 0xda7   :  { %3578 = vmatpush3.bf16.msra.mxu0 %v3899_v18 }
 0xe56   :  { %v2655_v43 = vpop.f32.mrf.mxu0 }
 0xe57   :  { %v2656_v32 = vadd.f32 %v2655_v43, %v2454_v56 }
 0xe58   :  { %v2657_v53 = vpop.f32.mrf.mxu0 }
 0xe59   :  { %v2658_v51 = vadd.f32 %v2657_v53, %v2458_v45  ;;  %v3324_v53 = vld [vmem:[%s5075_s12] ss:$0 sm:$0xff] }
 0xe5a   :  { %v2659_v29 = vpop.f32.mrf.mxu0 }
 0xe5b   :  { %v2660_v34 = vadd.f32 %v2659_v29, %v2454_v56 }
 0xe5c   :  { %v2661_v21 = vpop.f32.mrf.mxu0 }
 0xe5d   :  { %v2662_v14 = vadd.f32 %v2661_v21, %v2458_v45  ;;  %v2674_v52 = vpack.c.bf16 %v2660_v34, %v2656_v32 }
 0xe5e   :  { %v2665_v17 = vpop.f32.mrf.mxu0 }
 0xe5f   :  { %v2666_v50 = vadd.f32 %v2665_v17, %v2454_v56  ;;  %v2675_v37 = vpack.c.bf16 %v2662_v14, %v2658_v51 }
 0xe60   :  { %v2667_v27 = vpop.f32.mrf.mxu0 }
 0xe61   :  { %v2668_v6 = vadd.f32 %v2667_v27, %v2458_v45 }
 0xe62   :  { %v2669_v0 = vpop.f32.mrf.mxu0 }
 0xe63   :  { %v2670_v9 = vadd.f32 %v2669_v0, %v2454_v56 }
 0xe64   :  { %v2671_v19 = vpop.f32.mrf.mxu0 }
 0xe65   :  { %v2672_v49 = vadd.f32 %v2671_v19, %v2458_v45  ;;  %v2708_v39 = vpack.c.bf16 %v2670_v9, %v2666_v50 }
 0xe67   :  { %v2709_v59 = vpack.c.bf16 %v2672_v49, %v2668_v6 }
 0xe69   :  { %2870 = vmatprep.mubr.bf16.mxu1 %v2709_v59 }
 0xe6a   :  { %2871 = vmatmul.mubr.bf16.vlgmr.msra.gmra.mxu1 %v2708_v39 }
 0xe6b   :  { %3417 = vmatpush3.bf16.msra.mxu1 %v3881_v13  ;;  %3007 = vmatprep.mubr.bf16.mxu1 %v2675_v37 }
 0xe6c   :  { %3418 = vmatprep.subr.bf16.mxu1 %v3882_v31 }
 0xe6f   :  { %3419 = vmatpush3.bf16.msra.mxu1 %v3883_v25 }
 0xe70   :  { %3420 = vmatprep.subr.bf16.mxu1 %v3884_v44 }
 0xe73   :  { %3421 = vmatpush3.bf16.msra.mxu1 %v3885_v5 }
 0xe74   :  { %3422 = vmatprep.subr.bf16.mxu1 %v3886_v55 }
 0xe77   :  { %3423 = vmatpush3.bf16.msra.mxu1 %v3887_v28 }
 0xe78   :  { %3424 = vmatprep.subr.bf16.mxu1 %v3888_v62 }
 0xe7b   :  { %3425 = vmatpush3.bf16.msra.mxu1 %v3889_v57 }
 0xe7c   :  { %3426 = vmatprep.subr.bf16.mxu1 %v3890_v33 }
 0xe7f   :  { %3427 = vmatpush3.bf16.msra.mxu1 %v3891_v10 }
 0xe80   :  { %3428 = vmatprep.subr.bf16.mxu1 %v3892_v46 }
 0xe83   :  { %3429 = vmatpush3.bf16.msra.mxu1 %v3893_v3 }
 0xe84   :  { %3430 = vmatprep.subr.bf16.mxu1 %v3894_v26 }
 0xe87   :  { %3431 = vmatpush3.bf16.msra.mxu1 %v3895_v54 }
 0xe8a   :  { %3008 = vmatmul.mubr.bf16.vlgmr.msra.gmra.mxu1 %v2674_v52 }
 0xf2a   :  { %v3410_v22 = vpop.f32.mrf.mxu1 }
 0xf2c   :  { %v3411_v24 = vpop.f32.mrf.mxu1 }
 0xf2d   :  { %v3412_v8 = vadd.f32 %v3411_v24, %v3410_v22 }
 0xf2e   :  { %v3413_v15 = vpop.f32.mrf.mxu1 }
 0xf30   :  { %v3414_v7 = vpop.f32.mrf.mxu1 }
 0xf31   :  { %v3415_v58 = vadd.f32 %v3414_v7, %v3413_v15 }
 0xf4a   :  { %v3432_v35 = vpop.f32.mrf.mxu1 }
 0xf4c   :  { %v3433_v38 = vpop.f32.mrf.mxu1 }
 0xf4d   :  { %v3434_v36 = vadd.f32 %v3433_v38, %v3432_v35 }
 0xf4e   :  { %v3435_v20 = vpop.f32.mrf.mxu1 }
 0xf4f   :  { %v3010_v12 = vadd.f32 %v3434_v36, %v3412_v8 }
 0xf50   :  { %v3436_v47 = vpop.f32.mrf.mxu1 }
 0xf51   :  { %v3437_v16 = vadd.f32 %v3436_v47, %v3435_v20  ;;  %v3023_v23 = vadd.f32 %v3323_v42, %v3010_v12 }
 0xf53   :  { %v3013_v60 = vadd.f32 %v3437_v16, %v3415_v58  ;;  %v3025_v48 = vmax.f32 %v3023_v23, 0.0 }
 0xf55   :  { %v3024_v61 = vadd.f32 %v3323_v42, %v3013_v60 }
 0xf57   :  { %v3026_v4 = vmax.f32 %v3024_v61, 0.0 }
 0xf59   :  { %v3027_v43 = vpack.c.bf16 %v3026_v4, %v3025_v48 }
 0xf5b   :  { %3580 = vmatmul.mubr.msk.bf16.vlgmr.msra.gmra.mxu0 %vm2391_vm1, %v3027_v43 }
0x101b   :  { %v3104_v29 = vpop.f32.mrf.mxu0 }
0x101c   :  { %v3105_v21 = vadd.f32 %v3324_v53, %v3104_v29 }
0x101d   :  { %v3581_v17 = vpop.f32.mrf.mxu0 }
0x101e   :  { %3111 = vst [vmem:[#allocation8] sm:$0xff] %v3105_v21 }
0x101f   :  { %v3107_v2 = vpop.f32.mrf.mxu0 }
0x1020   :  { %v3108_v27 = vadd.f32 %v3324_v53, %v3107_v2 }
0x1021   :  { %v3582_v40 = vpop.f32.mrf.mxu0 }
0x1022   :  { %3112 = vst [vmem:[#allocation8 + $0x8] sm:$0xff] %v3108_v27 }
0x1023   :  { %4103 = shalt.err (!%p4100_p5)
}
0x1024   :  { %s4129_s17 = smov 128   ;;  %s4130_s12 = smov 8  }
0x1025   :  { %3124 = dma.vmem_to_hbm [thread:$0]  %s3119_s0, 256, %s5076_s13, [#allocation4], %s4129_s17, %s4129_s17, %s4130_s12  }
0x1026   :  { %4116 = dma.done.wait [#allocation4], 256  }
0x1027   :  { %4117 = vsyncadd [#allocation4], 4294967040 }
0x1028   :  { %3128 = vsyncpa [#allocation3], 1 }
0x1029   :  { %3129 = vsyncpa [#allocation6], 1 }
0x102a   :  { %3130 = vsyncpa [#allocation4], 1 }

</bundles_post_ra>
